<compile_context>
chip_gen: v5e
topology: v5e:2x2
jax: 0.10.0
libtpu: 0.0.40
codegen_flags: <defaults>
</compile_context>

<pallas_src>
import functools

import jax
import jax.numpy as jnp
from jax.experimental import pallas as pl
from jax.experimental.pallas import tpu as pltpu


def _round_up(v, m):
    return ((v + m - 1) // m) * m


def _fused_sage_kernel(a_ref, x_ref, w_ref, b_ref, o_ref, h0_ref, h1_ref, *, tm):
    """Fused 3-layer GraphSAGE forward. grid = (3 layers, num_row_tiles)."""
    layer_id = pl.program_id(0)
    tile_id = pl.program_id(1)
    row0 = pl.multiple_of(tile_id * tm, tm)

    def sage_layer(h_in_ref):
        # Neighbor mean aggregation for this row tile: (TM, Npad) @ (Npad, Dpad).
        agg = jnp.dot(a_ref[...], h_in_ref[...],
                      preferred_element_type=jnp.float32)
        # One fused K = 2*Dpad MXU dot: [agg | x_root] @ [Wl ; Wr] + b.
        cat = jnp.concatenate(
            [agg.astype(jnp.bfloat16), h_in_ref[pl.ds(row0, tm), :]], axis=-1)
        return (jnp.dot(cat, w_ref[0], preferred_element_type=jnp.float32)
                + b_ref[0])

    @pl.when(layer_id == 0)
    def _():
        h = sage_layer(x_ref)
        h0_ref[pl.ds(row0, tm), :] = jnp.maximum(h, 0.0).astype(jnp.bfloat16)

    @pl.when(layer_id == 1)
    def _():
        h = sage_layer(h0_ref)
        h1_ref[pl.ds(row0, tm), :] = jnp.maximum(h, 0.0).astype(jnp.bfloat16)

    @pl.when(layer_id == 2)
    def _():
        h = sage_layer(h1_ref)           # no relu after conv3
        o_ref[pl.ds(row0, tm), :] = h.astype(o_ref.dtype)


def build_mean_adjacency(edge_index, num_nodes, padded_nodes):
    """Row-normalized dense adjacency, padded: A[dst, src] = 1/in_degree(dst)."""
    src = edge_index[0]
    dst = edge_index[1]
    a = jnp.zeros((padded_nodes, padded_nodes), dtype=jnp.float32)
    a = a.at[dst, src].add(1.0)
    deg = jnp.sum(a, axis=1, keepdims=True)
    a = a / jnp.maximum(deg, 1.0)
    return a.astype(jnp.bfloat16)


def pack_params(params, dpad):
    """Pad each layer to (dpad, dpad), concat [Wl; Wr], stack layers."""
    w_list, b_list = [], []
    for wl_t, wr_t, b in params:
        fin, fout = wl_t.shape
        wl_p = jnp.zeros((dpad, dpad), jnp.float32).at[:fin, :fout].set(wl_t)
        wr_p = jnp.zeros((dpad, dpad), jnp.float32).at[:fin, :fout].set(wr_t)
        w_list.append(jnp.concatenate([wl_p, wr_p], axis=0))       # (2*dpad, dpad)
        b_list.append(jnp.zeros((1, dpad), jnp.float32).at[:, :fout].set(b))
    w = jnp.stack(w_list).astype(jnp.bfloat16)                     # (L, 2*dpad, dpad)
    bias = jnp.stack(b_list)                                       # (L, 1, dpad) f32
    return w, bias


def init_params(key, dims):
    """dims = [F_in, H1, H2, num_classes]. Returns list of (Wl_t, Wr_t, b)."""
    params = []
    for fin, fout in zip(dims[:-1], dims[1:]):
        key, k1, k2 = jax.random.split(key, 3)
        scale = 1.0 / jnp.sqrt(jnp.float32(fin))
        wl_t = jax.random.uniform(k1, (fin, fout), jnp.float32, -scale, scale)
        wr_t = jax.random.uniform(k2, (fin, fout), jnp.float32, -scale, scale)
        b = jnp.zeros((1, fout), jnp.float32)
        params.append((wl_t, wr_t, b))
    return params


def graphsage2_forward(x, edge_index, params):
    assert len(params) == 3, "kernel is specialized for the 3-layer GraphSAGE2"
    n, f_in = x.shape
    feat_dims = [f_in] + [p[0].shape[1] for p in params]
    dpad = _round_up(max(feat_dims), 128)          # lane-dense feature dim
    tm = 128 if n <= 128 else 256                  # adjacency row-tile
    npad = _round_up(n, tm)
    num_tiles = npad // tm

    a = build_mean_adjacency(edge_index, n, npad)                   # (npad, npad) bf16
    x_p = jnp.zeros((npad, dpad), jnp.bfloat16)
    x_p = x_p.at[:n, :f_in].set(x.astype(jnp.bfloat16))
    w, bias = pack_params(params, dpad)

    kernel = functools.partial(_fused_sage_kernel, tm=tm)
    out = pl.pallas_call(
        kernel,
        out_shape=jax.ShapeDtypeStruct((npad, dpad), jnp.float32),
        grid_spec=pltpu.PrefetchScalarGridSpec(
            num_scalar_prefetch=0,
            grid=(len(params), num_tiles),
            in_specs=[
                pl.BlockSpec((tm, npad), lambda l, t: (t, 0)),           # A row tile
                pl.BlockSpec((npad, dpad), lambda l, t: (0, 0)),         # X resident
                pl.BlockSpec((1, 2 * dpad, dpad), lambda l, t: (l, 0, 0)),  # [Wl;Wr] per layer
                pl.BlockSpec((1, 1, dpad), lambda l, t: (l, 0, 0)),      # bias per layer
            ],
            out_specs=pl.BlockSpec((npad, dpad), lambda l, t: (0, 0)),   # lane-dense, resident
            scratch_shapes=[
                pltpu.VMEM((npad, dpad), jnp.bfloat16),   # h1 activations
                pltpu.VMEM((npad, dpad), jnp.bfloat16),   # h2 activations
            ],
        ),
        compiler_params=pltpu.CompilerParams(
            dimension_semantics=("arbitrary", "arbitrary"),
            vmem_limit_bytes=48 * 1024 * 1024,
        ),
    )(a, x_p, w, bias)

    num_classes = params[-1][0].shape[1]
    return out[:n, :num_classes]


def graphsage2_reference(x, edge_index, params):
    """Pure-JAX f32 reference matching the PyTorch module (eval mode)."""
    n = x.shape[0]
    src, dst = edge_index[0], edge_index[1]
    a = jnp.zeros((n, n), jnp.float32).at[dst, src].add(1.0)
    a = a / jnp.maximum(jnp.sum(a, axis=1, keepdims=True), 1.0)
    h = x
    for i, (wl_t, wr_t, b) in enumerate(params):
        h = (a @ h) @ wl_t + h @ wr_t + b
        if i < len(params) - 1:
            h = jnp.maximum(h, 0.0)
    return h


if __name__ == "__main__":
    key = jax.random.PRNGKey(0)

    # Small synthetic graph: 32 nodes, 16 input features, hidden 32/32, 8 classes.
    num_nodes = 32
    num_features = 16
    hidden1 = 32
    hidden2 = 32
    num_classes = 8
    num_edges = 96

    key, kx, ke_src, ke_dst, kp = jax.random.split(key, 5)
    x = jax.random.normal(kx, (num_nodes, num_features), jnp.float32)
    edge_index = jnp.stack([
        jax.random.randint(ke_src, (num_edges,), 0, num_nodes),
        jax.random.randint(ke_dst, (num_edges,), 0, num_nodes),
    ]).astype(jnp.int32)

    params = init_params(kp, [num_features, hidden1, hidden2, num_classes])

    out = graphsage2_forward(x, edge_index, params)
    out = jax.block_until_ready(out)

    assert out.shape == (num_nodes, num_classes)
    assert bool(jnp.all(jnp.isfinite(out)))

    # Loose tolerance check against the f32 reference (bf16 MXU inputs).
    ref = graphsage2_reference(x, edge_index, params)
    err = float(jnp.max(jnp.abs(out - ref)))
    scale = float(jnp.max(jnp.abs(ref)))
    assert err <= 0.1 * max(1.0, scale), f"max err {err} vs scale {scale}"

    print("KERNEL_OK")
</pallas_src>

<mosaic_0001>
module attributes {stable_mosaic.version = 11 : i64} {
  func.func @_fused_sage_kernel(%arg0: i32, %arg1: i32, %arg2: memref<128x128xbf16, #tpu.memory_space<vmem>>, %arg3: memref<128x128xbf16, #tpu.memory_space<vmem>>, %arg4: memref<1x256x128xbf16, #tpu.memory_space<vmem>>, %arg5: memref<1x1x128xf32, #tpu.memory_space<vmem>>, %arg6: memref<128x128xf32, #tpu.memory_space<vmem>>, %arg7: memref<128x128xbf16, #tpu.memory_space<vmem>>, %arg8: memref<128x128xbf16, #tpu.memory_space<vmem>>) attributes {dimension_semantics = [#tpu.dimension_semantics<arbitrary>, #tpu.dimension_semantics<arbitrary>], iteration_bounds = array<i64: 3, 1>, scalar_prefetch = 0 : i64, scratch_operands = 2 : i64, tpu.core_type = #tpu.core_type<tc>, window_params = [{transform_indices = @transform_0, window_bounds = array<i64: 128, 128>}, {pipeline_mode = #tpu.pipeline_mode<synchronous>, transform_indices = @transform_1, window_bounds = array<i64: 128, 128>}, {transform_indices = @transform_2, window_bounds = array<i64: 1, 256, 128>}, {transform_indices = @transform_3, window_bounds = array<i64: 1, 1, 128>}, {pipeline_mode = #tpu.pipeline_mode<synchronous>, transform_indices = @transform_4, window_bounds = array<i64: 128, 128>}]} {
    %c128_i32 = arith.constant 128 : i32
    %0 = arith.muli %arg1, %c128_i32 : i32
    %1 = tpu.assume_multiple %0, 128 : i32
    %c0_i32 = arith.constant 0 : i32
    %2 = arith.cmpi eq, %arg0, %c0_i32 : i32
    %3 = arith.extui %2 : i1 to i32
    %c0_i32_0 = arith.constant 0 : i32
    %4 = arith.cmpi ne, %3, %c0_i32_0 : i32
    scf.if %4 {
      %c0 = arith.constant 0 : index
      %c0_3 = arith.constant 0 : index
      %11 = vector.load %arg2[%c0, %c0_3] : memref<128x128xbf16, #tpu.memory_space<vmem>>, vector<128x128xbf16>
      %c0_4 = arith.constant 0 : index
      %c0_5 = arith.constant 0 : index
      %12 = vector.load %arg3[%c0_4, %c0_5] : memref<128x128xbf16, #tpu.memory_space<vmem>>, vector<128x128xbf16>
      %cst = arith.constant dense<0.000000e+00> : vector<128x128xf32>
      %13 = tpu.matmul %11, %12, %cst {dimension_numbers = #tpu.dot_dimension_numbers<[1], [0], [0], [1], [0, 0, 1, 1], [], []>} : vector<128x128xbf16>, vector<128x128xbf16>, vector<128x128xf32> -> vector<128x128xf32>
      %14 = arith.truncf %13 : vector<128x128xf32> to vector<128x128xbf16>
      %15 = arith.index_cast %1 : i32 to index
      %c0_6 = arith.constant 0 : index
      %16 = vector.load %arg3[%15, %c0_6] : memref<128x128xbf16, #tpu.memory_space<vmem>>, vector<128x128xbf16>
      %17 = tpu.concatenate %14, %16 in 1 : vector<128x128xbf16>, vector<128x128xbf16> -> vector<128x256xbf16>
      %c0_7 = arith.constant 0 : index
      %c0_8 = arith.constant 0 : index
      %c0_9 = arith.constant 0 : index
      %18 = vector.load %arg4[%c0_7, %c0_8, %c0_9] : memref<1x256x128xbf16, #tpu.memory_space<vmem>>, vector<1x256x128xbf16>
      %19 = vector.shape_cast %18 : vector<1x256x128xbf16> to vector<256x128xbf16>
      %cst_10 = arith.constant dense<0.000000e+00> : vector<128x128xf32>
      %20 = tpu.matmul %17, %19, %cst_10 {dimension_numbers = #tpu.dot_dimension_numbers<[1], [0], [0], [1], [0, 0, 1, 1], [], []>} : vector<128x256xbf16>, vector<256x128xbf16>, vector<128x128xf32> -> vector<128x128xf32>
      %c0_11 = arith.constant 0 : index
      %c0_12 = arith.constant 0 : index
      %c0_13 = arith.constant 0 : index
      %21 = vector.load %arg5[%c0_11, %c0_12, %c0_13] : memref<1x1x128xf32, #tpu.memory_space<vmem>>, vector<1x1x128xf32>
      %22 = vector.shape_cast %21 : vector<1x1x128xf32> to vector<1x128xf32>
      %23 = vector.broadcast %22 : vector<1x128xf32> to vector<128x128xf32>
      %24 = arith.addf %20, %23 : vector<128x128xf32>
      %cst_14 = arith.constant 0.000000e+00 : f32
      %25 = vector.broadcast %cst_14 : f32 to vector<128x128xf32>
      %26 = arith.maximumf %24, %25 : vector<128x128xf32>
      %27 = arith.truncf %26 : vector<128x128xf32> to vector<128x128xbf16>
      %28 = arith.index_cast %1 : i32 to index
      %c0_15 = arith.constant 0 : index
      %29 = vector.load %arg7[%28, %c0_15] : memref<128x128xbf16, #tpu.memory_space<vmem>>, vector<128x128xbf16>
      tpu.vector_store %arg7[%28, %c0_15], %27 {strides = array<i32>} : memref<128x128xbf16, #tpu.memory_space<vmem>>, vector<128x128xbf16>,
    } else {
    }
    %c1_i32 = arith.constant 1 : i32
    %5 = arith.cmpi eq, %arg0, %c1_i32 : i32
    %6 = arith.extui %5 : i1 to i32
    %c0_i32_1 = arith.constant 0 : i32
    %7 = arith.cmpi ne, %6, %c0_i32_1 : i32
    scf.if %7 {
      %c0 = arith.constant 0 : index
      %c0_3 = arith.constant 0 : index
      %11 = vector.load %arg2[%c0, %c0_3] : memref<128x128xbf16, #tpu.memory_space<vmem>>, vector<128x128xbf16>
      %c0_4 = arith.constant 0 : index
      %c0_5 = arith.constant 0 : index
      %12 = vector.load %arg7[%c0_4, %c0_5] : memref<128x128xbf16, #tpu.memory_space<vmem>>, vector<128x128xbf16>
      %cst = arith.constant dense<0.000000e+00> : vector<128x128xf32>
      %13 = tpu.matmul %11, %12, %cst {dimension_numbers = #tpu.dot_dimension_numbers<[1], [0], [0], [1], [0, 0, 1, 1], [], []>} : vector<128x128xbf16>, vector<128x128xbf16>, vector<128x128xf32> -> vector<128x128xf32>
      %14 = arith.truncf %13 : vector<128x128xf32> to vector<128x128xbf16>
      %15 = arith.index_cast %1 : i32 to index
      %c0_6 = arith.constant 0 : index
      %16 = vector.load %arg7[%15, %c0_6] : memref<128x128xbf16, #tpu.memory_space<vmem>>, vector<128x128xbf16>
      %17 = tpu.concatenate %14, %16 in 1 : vector<128x128xbf16>, vector<128x128xbf16> -> vector<128x256xbf16>
      %c0_7 = arith.constant 0 : index
      %c0_8 = arith.constant 0 : index
      %c0_9 = arith.constant 0 : index
      %18 = vector.load %arg4[%c0_7, %c0_8, %c0_9] : memref<1x256x128xbf16, #tpu.memory_space<vmem>>, vector<1x256x128xbf16>
      %19 = vector.shape_cast %18 : vector<1x256x128xbf16> to vector<256x128xbf16>
      %cst_10 = arith.constant dense<0.000000e+00> : vector<128x128xf32>
      %20 = tpu.matmul %17, %19, %cst_10 {dimension_numbers = #tpu.dot_dimension_numbers<[1], [0], [0], [1], [0, 0, 1, 1], [], []>} : vector<128x256xbf16>, vector<256x128xbf16>, vector<128x128xf32> -> vector<128x128xf32>
      %c0_11 = arith.constant 0 : index
      %c0_12 = arith.constant 0 : index
      %c0_13 = arith.constant 0 : index
      %21 = vector.load %arg5[%c0_11, %c0_12, %c0_13] : memref<1x1x128xf32, #tpu.memory_space<vmem>>, vector<1x1x128xf32>
      %22 = vector.shape_cast %21 : vector<1x1x128xf32> to vector<1x128xf32>
      %23 = vector.broadcast %22 : vector<1x128xf32> to vector<128x128xf32>
      %24 = arith.addf %20, %23 : vector<128x128xf32>
      %cst_14 = arith.constant 0.000000e+00 : f32
      %25 = vector.broadcast %cst_14 : f32 to vector<128x128xf32>
      %26 = arith.maximumf %24, %25 : vector<128x128xf32>
      %27 = arith.truncf %26 : vector<128x128xf32> to vector<128x128xbf16>
      %28 = arith.index_cast %1 : i32 to index
      %c0_15 = arith.constant 0 : index
      %29 = vector.load %arg8[%28, %c0_15] : memref<128x128xbf16, #tpu.memory_space<vmem>>, vector<128x128xbf16>
      tpu.vector_store %arg8[%28, %c0_15], %27 {strides = array<i32>} : memref<128x128xbf16, #tpu.memory_space<vmem>>, vector<128x128xbf16>,
    } else {
    }
    %c2_i32 = arith.constant 2 : i32
    %8 = arith.cmpi eq, %arg0, %c2_i32 : i32
    %9 = arith.extui %8 : i1 to i32
    %c0_i32_2 = arith.constant 0 : i32
    %10 = arith.cmpi ne, %9, %c0_i32_2 : i32
    scf.if %10 {
      %c0 = arith.constant 0 : index
      %c0_3 = arith.constant 0 : index
      %11 = vector.load %arg2[%c0, %c0_3] : memref<128x128xbf16, #tpu.memory_space<vmem>>, vector<128x128xbf16>
      %c0_4 = arith.constant 0 : index
      %c0_5 = arith.constant 0 : index
      %12 = vector.load %arg8[%c0_4, %c0_5] : memref<128x128xbf16, #tpu.memory_space<vmem>>, vector<128x128xbf16>
      %cst = arith.constant dense<0.000000e+00> : vector<128x128xf32>
      %13 = tpu.matmul %11, %12, %cst {dimension_numbers = #tpu.dot_dimension_numbers<[1], [0], [0], [1], [0, 0, 1, 1], [], []>} : vector<128x128xbf16>, vector<128x128xbf16>, vector<128x128xf32> -> vector<128x128xf32>
      %14 = arith.truncf %13 : vector<128x128xf32> to vector<128x128xbf16>
      %15 = arith.index_cast %1 : i32 to index
      %c0_6 = arith.constant 0 : index
      %16 = vector.load %arg8[%15, %c0_6] : memref<128x128xbf16, #tpu.memory_space<vmem>>, vector<128x128xbf16>
      %17 = tpu.concatenate %14, %16 in 1 : vector<128x128xbf16>, vector<128x128xbf16> -> vector<128x256xbf16>
      %c0_7 = arith.constant 0 : index
      %c0_8 = arith.constant 0 : index
      %c0_9 = arith.constant 0 : index
      %18 = vector.load %arg4[%c0_7, %c0_8, %c0_9] : memref<1x256x128xbf16, #tpu.memory_space<vmem>>, vector<1x256x128xbf16>
      %19 = vector.shape_cast %18 : vector<1x256x128xbf16> to vector<256x128xbf16>
      %cst_10 = arith.constant dense<0.000000e+00> : vector<128x128xf32>
      %20 = tpu.matmul %17, %19, %cst_10 {dimension_numbers = #tpu.dot_dimension_numbers<[1], [0], [0], [1], [0, 0, 1, 1], [], []>} : vector<128x256xbf16>, vector<256x128xbf16>, vector<128x128xf32> -> vector<128x128xf32>
      %c0_11 = arith.constant 0 : index
      %c0_12 = arith.constant 0 : index
      %c0_13 = arith.constant 0 : index
      %21 = vector.load %arg5[%c0_11, %c0_12, %c0_13] : memref<1x1x128xf32, #tpu.memory_space<vmem>>, vector<1x1x128xf32>
      %22 = vector.shape_cast %21 : vector<1x1x128xf32> to vector<1x128xf32>
      %23 = vector.broadcast %22 : vector<1x128xf32> to vector<128x128xf32>
      %24 = arith.addf %20, %23 : vector<128x128xf32>
      %25 = arith.index_cast %1 : i32 to index
      %c0_14 = arith.constant 0 : index
      %26 = vector.load %arg6[%25, %c0_14] : memref<128x128xf32, #tpu.memory_space<vmem>>, vector<128x128xf32>
      tpu.vector_store %arg6[%25, %c0_14], %24 {strides = array<i32>} : memref<128x128xf32, #tpu.memory_space<vmem>>, vector<128x128xf32>,
    } else {
    }
    return
  }
  func.func @transform_0(%arg0: i32, %arg1: i32) -> (i32, i32) {
    %c0_i32 = arith.constant 0 : i32
    %c0_i32_0 = arith.constant 0 : i32
    return %arg1, %c0_i32 : i32, i32
  }
  func.func @transform_1(%arg0: i32, %arg1: i32) -> (i32, i32) {
    %c0_i32 = arith.constant 0 : i32
    %c0_i32_0 = arith.constant 0 : i32
    %c0_i32_1 = arith.constant 0 : i32
    return %c0_i32, %c0_i32_0 : i32, i32
  }
  func.func @transform_2(%arg0: i32, %arg1: i32) -> (i32, i32, i32) {
    %c0_i32 = arith.constant 0 : i32
    %c0_i32_0 = arith.constant 0 : i32
    %c0_i32_1 = arith.constant 0 : i32
    return %arg0, %c0_i32, %c0_i32_0 : i32, i32, i32
  }
  func.func @transform_3(%arg0: i32, %arg1: i32) -> (i32, i32, i32) {
    %c0_i32 = arith.constant 0 : i32
    %c0_i32_0 = arith.constant 0 : i32
    %c0_i32_1 = arith.constant 0 : i32
    return %arg0, %c0_i32, %c0_i32_0 : i32, i32, i32
  }
  func.func @transform_4(%arg0: i32, %arg1: i32) -> (i32, i32) {
    %c0_i32 = arith.constant 0 : i32
    %c0_i32_0 = arith.constant 0 : i32
    %c0_i32_1 = arith.constant 0 : i32
    return %c0_i32, %c0_i32_0 : i32, i32
  }
}

</mosaic_0001>

<bundles_post_ra>
// kernel: tpu_custom_call.1
= control target key start
LH: loop header
LB: loop body
LE: loop exit
PB: predicated region body
PF: predicated region fallthrough
CT: control target
= control target key end

     0   :  { %s3542_s0 = inlined_call_operand.hbm [shape: bf16[128,128], index: 0, kind: input, shape index: {}]   ;;  %s3543_s1 = inlined_call_operand.hbm [shape: bf16[128,128], index: 1, kind: input, shape index: {}]   ;;  %s3544_s2 = inlined_call_operand.hbm [shape: bf16[3,256,128], index: 2, kind: input, shape index: {}]   ;;  %s3545_s3 = inlined_call_operand.hbm [shape: f32[3,1,128], index: 3, kind: input, shape index: {}]   ;;  %s3546_s4 = inlined_call_operand.hbm [shape: f32[128,128], index: 4, kind: output, shape index: {}]  }
   0x1   :  { %3551 = sst [smem:[#allocation16_spill]] %s3542_s0 }
   0x2   :  { %9 = vsyncpa [#allocation5], 0 }
   0x3   :  { %10 = vsyncpa [#allocation8], 0 }
   0x4   :  { %11 = vsyncpa [#allocation6], 0  ;;  %s3281_s15 = smov 0   ;;  %s3283_s16 = smov 0  }
   0x5   :  { %s3285_s17 = smov 0   ;;  %s3287_s18 = smov 0  }
   0x6   :  { %s3289_s19 = smov 0   ;;  %s3291_s20 = smov 0  }
   0x7 LB: > { %s3310_s21 = sadd.s32 4294967295, %s3247_s20   ;;  %p96_p0 = scmp.ne.s32.totalorder %s3231_s16, %s3227_s15  ;;  %s3247_s20 = sphi %s3291_s20, %s17_s20   ;;  %s3243_s19 = sphi %s3289_s19, %s3564_s19   ;;  %s3239_s18 = sphi %s3287_s18, %s3563_s18   ;;  %s3235_s17 = sphi %s3285_s17, %s3562_s17   ;;  %s3231_s16 = sphi %s3283_s16, %s3561_s16   ;;  %s3227_s15 = sphi %s3281_s15, %s3560_s15  }
   0x8   : > { %p97_p1 = scmp.eq.s32.totalorder %s3310_s21, 0  ;;  %p2157_p2 = scmp.ge.s32.totalorder %s3247_s20, 1 }
   0x9   : > { %p154_p3 = scmp.lt.s32.totalorder %s3247_s20, 4  ;;  %s3553_s0 = sld [smem:[#allocation16_spill]] }
   0xa   : > { %p3318_p4 = por %p97_p1, %p96_p0  ;;  %s3249_s27 = smov [#allocation4]  }
   0xb   : > { %p3325_p5 = pnand %p2157_p2, %p154_p3  ;;  %s170_s28 = sshll.u32 %s3249_s27, 4  ;;  %s171_s28 = int_to_ptr.vmem [resolvable:$true] %s170_s28 }
   0xc   : > { %s3547_s30 = smov 64   ;;  %s3549_s5 = smov 4  }
   0xd   : > { %p2958_p6 = pneg %p3325_p5  ;;  %s29_s6 = sadd.s32 1, %s3243_s19 }
   0xe   : > { %p31_p8 = scmp.ge.s32.totalorder %s29_s6, 3  ;;  %s83_s7 = sadd.s32 1, %s3235_s17 }
   0xf   : > { %s168_s25 = sshll.u32 %s3553_s0, 4  ;;  %p3333_p7 = pnand %p2958_p6, %p97_p1  ;;  %s169_s25 = int_to_ptr.hbm [resolvable:$true] %s168_s25 }
  0x10   : > { %p90_p9 = scmp.ne.s32.totalorder %s3235_s17, %s3231_s16  ;;  %p91_p10 = scmp.eq.s32.totalorder %s3247_s20, 0 }
  0x11   : > { %2961 = dma.hbm_to_vmem [thread:$0]  (!%p3333_p7), %s169_s25, 1024, %s171_s28, [#allocation5], %s3547_s30, %s3547_s30, %s3549_s5  }
  0x12   : > { %s3566_s6 = smov (%p31_p8, %s29_s6), 0  ;;  %p3349_p11 = por %p91_p10, %p90_p9 }
  0x13   : > { %p2974_p12 = scmp.lt.s32.totalorder %s3247_s20, 3  ;;  %s80_s9 = ssub.s32 %s3243_s19, %s3566_s6 }
  0x14   : > { %s198_s10 = sand.u32 1, %s3247_s20   ;;  %p81_p13 = scmp.eq.s32.totalorder %s80_s9, 0 }
  0x15   : > { %s200_s11 = sand.u32 1, %s3235_s17   ;;  %s2655_s12 = sshll.u32 %s3243_s19, 7 }
  0x16   : > { %s3360_s13 = scalar_select %p81_p13, %s3235_s17, %s83_s7  }
  0x17   : > { %s2161_s14 = sshll.u32 %s200_s11, 7  ;;  %s207_s24 = scalar_lea.hbm %s3544_s2, %s2655_s12 }
  0x18   : > { %s208_s25 = sshll.u32 %s207_s24, 4  ;;  %s202_s27 = scalar_lea.vmem [#allocation9], %s2161_s14  ;;  %s209_s25 = int_to_ptr.hbm [resolvable:$true] %s208_s25 }
  0x19   : > { %s210_s28 = sshll.u32 %s202_s27, 4  ;;  %p3369_p0 = pnand %p2974_p12, %p3349_p11  ;;  %s211_s28 = int_to_ptr.vmem [resolvable:$true] %s210_s28 }
  0x1a   : > { %s182_s5 = sshll.u32 %s3543_s1, 4  ;;  %s199_s15 = scalar_lea.sflag [#allocation5], %s198_s10  ;;  %s183_s5 = int_to_ptr.hbm [resolvable:$true] %s182_s5 }
  0x1b   : > { %s3558_s12 = smov 4   ;;  %s3559_s23 = smov 64  }
  0x1c   : > { %2968 = dma.hbm_to_vmem [thread:$0]  (!%p3369_p0), %s209_s25, 2048, %s211_s28, %s199_s15, %s3559_s23, %s3559_s23, %s3558_s12  }
  0x1d   : > { %s3252_s14 = smov [#allocation7]   ;;  %s226_s0 = scalar_lea.hbm %s3545_s3, %s3243_s19 }
  0x1e   : > { %s184_s8 = sshll.u32 %s3252_s14, 4  ;;  %s228_s30 = sshll.u32 %s226_s0, 4  ;;  %s185_s8 = int_to_ptr.vmem [resolvable:$true] %s184_s8  ;;  %s229_s30 = int_to_ptr.hbm [resolvable:$true] %s228_s30 }
  0x1f   : > { %2964 = dma.hbm_to_vmem [thread:$0]  (!%p3333_p7), %s183_s5, 1024, %s185_s8, [#allocation8], %s3559_s23, %s3559_s23, %s3558_s12  }
  0x20   : > { %s223_s7 = scalar_lea.vmem [#allocation10], %s200_s11  ;;  %239 = sbr.rel (%p3325_p5) target bundleno = 1252 (0x4e4), region = 36 }
  0x21   : > { %s230_s10 = sshll.u32 %s223_s7, 4  ;;  %s231_s10 = int_to_ptr.vmem [resolvable:$true] %s230_s10 }
  0x22   : > { %2971 = dma.hbm_to_vmem [thread:$0]  (!%p3369_p0), %s229_s30, 16, %s231_s10, %s199_s15  }
  0x25   : > { %3210 = dma.done.wait (%p97_p1), [#allocation5], 1024  }
  0x26   : > { %3212 = vsyncadd (%p97_p1), [#allocation5], 4294966272 }
  0x27   : > { %3214 = dma.done.wait (%p97_p1), [#allocation8], 1024  }
  0x28   : > { %3216 = vsyncadd (%p97_p1), [#allocation8], 4294966272  ;;  %s251_s0 = sand.u32 1, %s3310_s21   ;;  %s253_s29 = sand.u32 1, %s3231_s16  }
  0x29   : > { %s2167_s5 = sshll.u32 %s253_s29, 7  ;;  %s252_s26 = scalar_lea.sflag [#allocation5], %s251_s0 }
  0x2a   : > { %s3404_s11 = scalar_lea.vmem [#allocation9], %s2167_s5 }
  0x2b   : > { %3218 = dma.done.wait (%p3318_p4), %s252_s26, 2064  }
  0x2c   : > { %3220 = vsyncadd (%p3318_p4), %s252_s26, 4294965232  ;;  %s3410_s25 = scalar_lea.vmem [#allocation10], %s253_s29  ;;  %p2168_p2 = scmp.ne.s32.totalorder %s3239_s18, 0 }
  0x2e   : > { %294 = sbr.rel (%p2168_p2) target bundleno = 446 (0x1be), region = 56 }
  0x33   : > { %v2671_v0 = vld [vmem:[#allocation7 + $0x38] sm:$0xff]  ;;  %v2670_v1 = vld [vmem:[#allocation7 + $0x30] sm:$0xff]  ;;  %v2669_v2 = vld [vmem:[#allocation7 + $0x28] sm:$0xff] }
  0x34   : > { %423 = vmatpush.bf16.msra.mxu0 %v2671_v0  ;;  %2870 = vmatpush.bf16.msra.mxu3 %v2671_v0  ;;  %v2668_v3 = vld [vmem:[#allocation7 + $0x20] sm:$0xff]  ;;  %v2667_v4 = vld [vmem:[#allocation7 + $0x18] sm:$0xff]  ;;  %v2666_v5 = vld [vmem:[#allocation7 + $0x10] sm:$0xff] }
  0x35   : > { %v2665_v6 = vld [vmem:[#allocation7 + $0x8] sm:$0xff]  ;;  %v2664_v7 = vld [vmem:[#allocation7] sm:$0xff]  ;;  %v2662_v9 = vld [vmem:[#allocation4 + $0x30] sm:$0xff] }
  0x36   : > { %v2656_v8 = vld [vmem:[#allocation4] sm:$0xff]  ;;  %v2657_v10 = vld [vmem:[#allocation4 + $0x8] sm:$0xff]  ;;  %v2663_v11 = vld [vmem:[#allocation4 + $0x38] sm:$0xff] }
  0x37   : > { %v2658_v12 = vld [vmem:[#allocation4 + $0x10] sm:$0xff]  ;;  %v2659_v13 = vld [vmem:[#allocation4 + $0x18] sm:$0xff]  ;;  %v2693_v18 = vld [vmem:[%s3404_s11 + $0x68] sm:$0xff] }
  0x38   : > { %424 = vmatpush.bf16.msra.mxu0 %v2670_v1  ;;  %2871 = vmatpush.bf16.msra.mxu3 %v2670_v1  ;;  %v2695_v14 = vld [vmem:[%s3404_s11 + $0x78] sm:$0xff]  ;;  %v2694_v16 = vld [vmem:[%s3404_s11 + $0x70] sm:$0xff]  ;;  %v2685_v19 = vld [vmem:[%s3404_s11 + $0x28] sm:$0xff] }
  0x39   : > { %v2687_v15 = vld [vmem:[%s3404_s11 + $0x38] sm:$0xff]  ;;  %785 = vmatpush.bf16.msra.mxu2 %v2695_v14  ;;  %v2686_v17 = vld [vmem:[%s3404_s11 + $0x30] sm:$0xff]  ;;  %v2692_v20 = vld [vmem:[%s3404_s11 + $0x60] sm:$0xff] }
  0x3a   : > { %736 = vmatpush.bf16.msra.mxu1 %v2687_v15  ;;  %v2684_v21 = vld [vmem:[%s3404_s11 + $0x20] sm:$0xff]  ;;  %v2691_v23 = vld [vmem:[%s3404_s11 + $0x58] sm:$0xff]  ;;  %v2690_v24 = vld [vmem:[%s3404_s11 + $0x50] sm:$0xff] }
  0x3b   : > { %v2660_v22 = vld [vmem:[#allocation4 + $0x20] sm:$0xff]  ;;  %v2689_v25 = vld [vmem:[%s3404_s11 + $0x48] sm:$0xff]  ;;  %v2683_v27 = vld [vmem:[%s3404_s11 + $0x18] sm:$0xff] }
  0x3c   : > { %425 = vmatpush.bf16.msra.mxu0 %v2669_v2  ;;  %2872 = vmatpush.bf16.msra.mxu3 %v2669_v2  ;;  %v2661_v26 = vld [vmem:[#allocation4 + $0x28] sm:$0xff]  ;;  %v2688_v28 = vld [vmem:[%s3404_s11 + $0x40] sm:$0xff]  ;;  %v2682_v30 = vld [vmem:[%s3404_s11 + $0x10] sm:$0xff] }
  0x3d   : > { %786 = vmatpush.bf16.msra.mxu2 %v2694_v16  ;;  %v2672_v29 = vld [vmem:[#allocation7] sm:$0xff]  ;;  %v2681_v31 = vld [vmem:[%s3404_s11 + $0x8] sm:$0xff]  ;;  %v2674_v35 = vld [vmem:[#allocation7 + $0x10] sm:$0xff] }
  0x3e   : > { %737 = vmatpush.bf16.msra.mxu1 %v2686_v17  ;;  %v2680_v32 = vld [vmem:[%s3404_s11] sm:$0xff]  ;;  %v2673_v33 = vld [vmem:[#allocation7 + $0x8] sm:$0xff]  ;;  %v2675_v49 = vld [vmem:[#allocation7 + $0x18] sm:$0xff] }
  0x3f   : > { %v2676_v0 = vld [vmem:[#allocation7 + $0x20] sm:$0xff] }
  0x40   : > { %426 = vmatpush.bf16.msra.mxu0 %v2668_v3  ;;  %2873 = vmatpush.bf16.msra.mxu3 %v2668_v3 }
  0x41   : > { %787 = vmatpush.bf16.msra.mxu2 %v2693_v18 }
  0x42   : > { %738 = vmatpush.bf16.msra.mxu1 %v2685_v19 }
  0x44   : > { %427 = vmatpush.bf16.msra.mxu0 %v2667_v4  ;;  %2874 = vmatpush.bf16.msra.mxu3 %v2667_v4 }
  0x45   : > { %788 = vmatpush.bf16.msra.mxu2 %v2692_v20 }
  0x46   : > { %739 = vmatpush.bf16.msra.mxu1 %v2684_v21 }
  0x48   : > { %428 = vmatpush.bf16.msra.mxu0 %v2666_v5  ;;  %2875 = vmatpush.bf16.msra.mxu3 %v2666_v5 }
  0x49   : > { %789 = vmatpush.bf16.msra.mxu2 %v2691_v23 }
  0x4a   : > { %740 = vmatpush.bf16.msra.mxu1 %v2683_v27 }
  0x4c   : > { %429 = vmatpush.bf16.msra.mxu0 %v2665_v6  ;;  %2876 = vmatpush.bf16.msra.mxu3 %v2665_v6 }
  0x4d   : > { %790 = vmatpush.bf16.msra.mxu2 %v2690_v24 }
  0x4e   : > { %741 = vmatpush.bf16.msra.mxu1 %v2682_v30 }
  0x50   : > { %430 = vmatpush.bf16.msra.mxu0 %v2664_v7  ;;  %2877 = vmatpush.bf16.msra.mxu3 %v2664_v7 }
  0x51   : > { %791 = vmatpush.bf16.msra.mxu2 %v2689_v25 }
  0x52   : > { %742 = vmatpush.bf16.msra.mxu1 %v2681_v31 }
  0x53   : > { %431 = vmatmul.bf16.vlgmr.msra.gmra.mxu0 %v2656_v8  ;;  %461 = vmatmul.bf16.vlgmr.msra.gmra.mxu3 %v2662_v9  ;;  %v2678_v9 = vld [vmem:[#allocation7 + $0x30] sm:$0xff] }
  0x54   : > { %2878 = vmatpush.bf16.msrb.mxu3 %v2687_v15 }
  0x55   : > { %792 = vmatpush.bf16.msra.mxu2 %v2688_v28 }
  0x56   : > { %743 = vmatpush.bf16.msra.mxu1 %v2680_v32 }
  0x58   : > { %2879 = vmatpush.bf16.msrb.mxu3 %v2686_v17  ;;  %793 = vmatmul.bf16.vlgmr.msra.gmra.mxu2 %v2672_v29 }
  0x5c   : > { %2880 = vmatpush.bf16.msrb.mxu3 %v2685_v19 }
  0x60   : > { %2881 = vmatpush.bf16.msrb.mxu3 %v2684_v21 }
  0x63   : > { %436 = vmatmul.bf16.gmra.mxu0 %v2657_v10  ;;  %466 = vmatmul.bf16.gmra.mxu3 %v2663_v11  ;;  %v2677_v10 = vld [vmem:[#allocation7 + $0x28] sm:$0xff] }
  0x64   : > { %2882 = vmatpush.bf16.msrb.mxu3 %v2683_v27 }
  0x68   : > { %2883 = vmatpush.bf16.msrb.mxu3 %v2682_v30  ;;  %798 = vmatmul.bf16.gmra.mxu2 %v2673_v33 }
  0x6c   : > { %2884 = vmatpush.bf16.msrb.mxu3 %v2681_v31 }
  0x70   : > { %2885 = vmatpush.bf16.msrb.mxu3 %v2680_v32 }
  0x73   : > { %441 = vmatmul.bf16.gmra.mxu0 %v2658_v12 }
  0x74   : > { %2886 = vmatpush.bf16.msra.mxu3 %v2695_v14 }
  0x78   : > { %2887 = vmatpush.bf16.msra.mxu3 %v2694_v16  ;;  %803 = vmatmul.bf16.gmra.mxu2 %v2674_v35 }
  0x7c   : > { %2888 = vmatpush.bf16.msra.mxu3 %v2693_v18  ;;  %v2679_v18 = vld [vmem:[#allocation7 + $0x38] sm:$0xff] }
  0x80   : > { %2889 = vmatpush.bf16.msra.mxu3 %v2692_v20 }
  0x83   : > { %446 = vmatmul.bf16.gmra.mxu0 %v2659_v13 }
  0x84   : > { %2890 = vmatpush.bf16.msra.mxu3 %v2691_v23 }
  0x88   : > { %2891 = vmatpush.bf16.msra.mxu3 %v2690_v24  ;;  %808 = vmatmul.bf16.gmra.mxu2 %v2675_v49 }
  0x8c   : > { %2892 = vmatpush.bf16.msra.mxu3 %v2689_v25 }
  0x90   : > { %2893 = vmatpush.bf16.msra.mxu3 %v2688_v28 }
  0x93   : > { %451 = vmatmul.bf16.gmra.mxu0 %v2660_v22 }
  0x98   : > { %813 = vmatmul.bf16.gmra.mxu2 %v2676_v0 }
  0xa3   : > { %456 = vmatmul.bf16.gmra.mxu0 %v2661_v26 }
  0xa8   : > { %818 = vmatmul.bf16.gmra.mxu2 %v2677_v10 }
  0xd0   : > { %v432_v34 = vpop.f32.mrf.mxu0 }
  0xd1   : > { %v472_v37 = vpack.c.bf16 %v432_v34, %v432_v34 }
  0xd3   : > { %v524_v40 = vunpack.c.l.b16 %v472_v37 }
  0xd6   : > { %v462_v36 = vpop.f32.mrf.mxu3 }
  0xd7   : > { %v484_v41 = vpack.c.bf16 %v462_v36, %v462_v36  ;;  %v3430_v36 = vld [vmem:[%s3410_s25] ss:$0 sm:$0xff] }
  0xd8   : > { %v434_v38 = vpop.f32.mrf.mxu0 }
  0xd9   : > { %v473_v39 = vpack.c.bf16 %v434_v38, %v434_v38  ;;  %v536_v45 = vunpack.c.l.b16 %v484_v41 }
  0xdb   : > { %v525_v42 = vunpack.c.l.b16 %v473_v39  ;;  %v794_v32 = vpop.f32.mrf.mxu2 }
  0xdd   : > { %v540_v43 = vpack.c.b16 %v525_v42, %v524_v40 }
  0xde   : > { %v464_v44 = vpop.f32.mrf.mxu3 }
  0xdf   : > { %v485_v46 = vpack.c.bf16 %v464_v44, %v464_v44  ;;  %744 = vmatmul.bf16.vlgmr.msra.gmra.mxu1 %v540_v43 }
  0xe0   : > { %v437_v47 = vpop.f32.mrf.mxu0 }
  0xe1   : > { %v537_v48 = vunpack.c.l.b16 %v485_v46  ;;  %v474_v52 = vpack.c.bf16 %v437_v47, %v437_v47 }
  0xe3   : > { %v546_v50 = vpack.c.b16 %v537_v48, %v536_v45  ;;  %v526_v55 = vunpack.c.l.b16 %v474_v52  ;;  %v796_v33 = vpop.f32.mrf.mxu2 }
  0xe5   : > { %774 = vmatmul.bf16.vlgmr.msrb.gmra.mxu3 %v546_v50 }
  0xe6   : > { %v467_v51 = vpop.f32.mrf.mxu3 }
  0xe7   : > { %v486_v56 = vpack.c.bf16 %v467_v51, %v467_v51 }
  0xe8   : > { %v439_v53 = vpop.f32.mrf.mxu0 }
  0xe9   : > { %v475_v54 = vpack.c.bf16 %v439_v53, %v439_v53  ;;  %v538_v60 = vunpack.c.l.b16 %v486_v56 }
  0xeb   : > { %v527_v57 = vunpack.c.l.b16 %v475_v54  ;;  %v799_v35 = vpop.f32.mrf.mxu2 }
  0xed   : > { %v541_v58 = vpack.c.b16 %v527_v57, %v526_v55 }
  0xee   : > { %v469_v59 = vpop.f32.mrf.mxu3 }
  0xef   : > { %v487_v61 = vpack.c.bf16 %v469_v59, %v469_v59  ;;  %749 = vmatmul.bf16.gmra.mxu1 %v541_v58 }
  0xf0   : > { %v442_v62 = vpop.f32.mrf.mxu0 }
  0xf1   : > { %v539_v63 = vunpack.c.l.b16 %v487_v61  ;;  %v476_v2 = vpack.c.bf16 %v442_v62, %v442_v62 }
  0xf3   : > { %v547_v1 = vpack.c.b16 %v539_v63, %v538_v60  ;;  %v528_v5 = vunpack.c.l.b16 %v476_v2  ;;  %v801_v41 = vpop.f32.mrf.mxu2 }
  0xf5   : > { %779 = vmatmul.bf16.gmra.mxu3 %v547_v1 }
  0xf8   : > { %v444_v3 = vpop.f32.mrf.mxu0 }
  0xf9   : > { %v477_v4 = vpack.c.bf16 %v444_v3, %v444_v3 }
  0xfb   : > { %v529_v6 = vunpack.c.l.b16 %v477_v4  ;;  %v804_v49 = vpop.f32.mrf.mxu2 }
  0xfd   : > { %v542_v7 = vpack.c.b16 %v529_v6, %v528_v5 }
  0xff   : > { %754 = vmatmul.bf16.gmra.mxu1 %v542_v7 }
 0x100   : > { %v447_v8 = vpop.f32.mrf.mxu0 }
 0x101   : > { %v478_v11 = vpack.c.bf16 %v447_v8, %v447_v8 }
 0x103   : > { %v530_v14 = vunpack.c.l.b16 %v478_v11  ;;  %v806_v58 = vpop.f32.mrf.mxu2 }
 0x105   : > { %823 = vmatmul.bf16.vlgmr.msra.gmra.mxu3 %v2678_v9 }
 0x108   : > { %v449_v12 = vpop.f32.mrf.mxu0 }
 0x109   : > { %v479_v13 = vpack.c.bf16 %v449_v12, %v449_v12 }
 0x10b   : > { %v531_v15 = vunpack.c.l.b16 %v479_v13  ;;  %v809_v0 = vpop.f32.mrf.mxu2 }
 0x10d   : > { %v543_v16 = vpack.c.b16 %v531_v15, %v530_v14 }
 0x10f   : > { %759 = vmatmul.bf16.gmra.mxu1 %v543_v16 }
 0x110   : > { %v452_v17 = vpop.f32.mrf.mxu0 }
 0x111   : > { %v480_v19 = vpack.c.bf16 %v452_v17, %v452_v17 }
 0x113   : > { %v532_v22 = vunpack.c.l.b16 %v480_v19  ;;  %v811_v10 = vpop.f32.mrf.mxu2 }
 0x115   : > { %828 = vmatmul.bf16.gmra.mxu3 %v2679_v18 }
 0x118   : > { %v454_v20 = vpop.f32.mrf.mxu0 }
 0x119   : > { %v481_v21 = vpack.c.bf16 %v454_v20, %v454_v20 }
 0x11b   : > { %v533_v23 = vunpack.c.l.b16 %v481_v21 }
 0x11d   : > { %v544_v24 = vpack.c.b16 %v533_v23, %v532_v22  ;;  %v814_v23 = vpop.f32.mrf.mxu2 }
 0x11f   : > { %764 = vmatmul.bf16.gmra.mxu1 %v544_v24 }
 0x120   : > { %v457_v25 = vpop.f32.mrf.mxu0 }
 0x121   : > { %v482_v26 = vpack.c.bf16 %v457_v25, %v457_v25 }
 0x123   : > { %v534_v29 = vunpack.c.l.b16 %v482_v26 }
 0x128   : > { %v459_v27 = vpop.f32.mrf.mxu0 }
 0x129   : > { %v483_v28 = vpack.c.bf16 %v459_v27, %v459_v27 }
 0x12b   : > { %v535_v30 = vunpack.c.l.b16 %v483_v28 }
 0x12d   : > { %v545_v31 = vpack.c.b16 %v535_v30, %v534_v29 }
 0x12f   : > { %769 = vmatmul.bf16.gmra.mxu1 %v545_v31 }
 0x15c   : > { %v745_v34 = vpop.f32.mrf.mxu1 }
 0x15d   : > { %v746_v37 = vadd.f32 %v3430_v36, %v745_v34 }
 0x15f   : > { %v795_v39 = vadd.f32 %v794_v32, %v746_v37 }
 0x161   : > { %v834_v44 = vmax.f32 %v795_v39, 0.0 }
 0x164   : > { %v747_v38 = vpop.f32.mrf.mxu1 }
 0x165   : > { %v748_v40 = vadd.f32 %v3430_v36, %v747_v38 }
 0x167   : > { %v797_v42 = vadd.f32 %v796_v33, %v748_v40 }
 0x168   : > { %v775_v43 = vpop.f32.mrf.mxu3 }
 0x169   : > { %v835_v45 = vmax.f32 %v797_v42, 0.0  ;;  %v776_v9 = vadd.f32 %v3430_v36, %v775_v43 }
 0x16b   : > { %v2779_v46 = vpack.c.bf16 %v835_v45, %v834_v44 }
 0x16c   : > { %v750_v47 = vpop.f32.mrf.mxu1 }
 0x16d   : > { %2780 = vst [vmem:[#allocation2 + $0x30] sm:$0xff] %v2779_v46   ;;  %v751_v50 = vadd.f32 %v3430_v36, %v750_v47 }
 0x16f   : > { %v800_v52 = vadd.f32 %v799_v35, %v751_v50  ;;  %v816_v35 = vpop.f32.mrf.mxu2 }
 0x170   : > { %v777_v48 = vpop.f32.mrf.mxu3 }
 0x171   : > { %v836_v56 = vmax.f32 %v800_v52, 0.0  ;;  %v778_v11 = vadd.f32 %v3430_v36, %v777_v48 }
 0x174   : > { %v752_v51 = vpop.f32.mrf.mxu1 }
 0x175   : > { %v753_v53 = vadd.f32 %v3430_v36, %v752_v51 }
 0x177   : > { %v802_v54 = vadd.f32 %v801_v41, %v753_v53  ;;  %v819_v47 = vpop.f32.mrf.mxu2 }
 0x178   : > { %v780_v55 = vpop.f32.mrf.mxu3 }
 0x179   : > { %v837_v57 = vmax.f32 %v802_v54, 0.0  ;;  %v781_v29 = vadd.f32 %v3430_v36, %v780_v55 }
 0x17b   : > { %v2784_v59 = vpack.c.bf16 %v837_v57, %v836_v56 }
 0x17c   : > { %v755_v60 = vpop.f32.mrf.mxu1 }
 0x17d   : > { %2856 = vst [vmem:[#allocation2] sm:$0xff] %v2784_v59   ;;  %v756_v62 = vadd.f32 %v3430_v36, %v755_v60 }
 0x17f   : > { %v805_v1 = vadd.f32 %v804_v49, %v756_v62  ;;  %v821_v53 = vpop.f32.mrf.mxu2 }
 0x180   : > { %v782_v61 = vpop.f32.mrf.mxu3 }
 0x181   : > { %v838_v5 = vmax.f32 %v805_v1, 0.0  ;;  %v783_v30 = vadd.f32 %v3430_v36, %v782_v61 }
 0x184   : > { %v757_v63 = vpop.f32.mrf.mxu1 }
 0x185   : > { %v758_v2 = vadd.f32 %v3430_v36, %v757_v63 }
 0x187   : > { %v807_v3 = vadd.f32 %v806_v58, %v758_v2 }
 0x188   : > { %v824_v4 = vpop.f32.mrf.mxu3 }
 0x189   : > { %v839_v6 = vmax.f32 %v807_v3, 0.0  ;;  %v825_v12 = vadd.f32 %v824_v4, %v776_v9 }
 0x18b   : > { %v2789_v7 = vpack.c.bf16 %v839_v6, %v838_v5  ;;  %v846_v16 = vmax.f32 %v825_v12, 0.0 }
 0x18c   : > { %v760_v8 = vpop.f32.mrf.mxu1 }
 0x18d   : > { %2857 = vst [vmem:[#allocation2 + $0x18] sm:$0xff] %v2789_v7   ;;  %v761_v14 = vadd.f32 %v3430_v36, %v760_v8 }
 0x18f   : > { %v810_v19 = vadd.f32 %v809_v0, %v761_v14 }
 0x190   : > { %v826_v13 = vpop.f32.mrf.mxu3 }
 0x191   : > { %v827_v15 = vadd.f32 %v826_v13, %v778_v11  ;;  %v840_v25 = vmax.f32 %v810_v19, 0.0 }
 0x193   : > { %v847_v17 = vmax.f32 %v827_v15, 0.0 }
 0x194   : > { %v762_v18 = vpop.f32.mrf.mxu1 }
 0x195   : > { %v2809_v20 = vpack.c.bf16 %v847_v17, %v846_v16  ;;  %v763_v21 = vadd.f32 %v3430_v36, %v762_v18 }
 0x197   : > { %2861 = vst [vmem:[#allocation2 + $0x28] sm:$0xff] %v2809_v20   ;;  %v812_v22 = vadd.f32 %v811_v10, %v763_v21 }
 0x198   : > { %v829_v24 = vpop.f32.mrf.mxu3 }
 0x199   : > { %v841_v26 = vmax.f32 %v812_v22, 0.0  ;;  %v830_v31 = vadd.f32 %v829_v24, %v781_v29 }
 0x19b   : > { %v2794_v27 = vpack.c.bf16 %v841_v26, %v840_v25  ;;  %v848_v37 = vmax.f32 %v830_v31, 0.0 }
 0x19c   : > { %v765_v28 = vpop.f32.mrf.mxu1 }
 0x19d   : > { %2858 = vst [vmem:[#allocation2 + $0x10] sm:$0xff] %v2794_v27   ;;  %v766_v33 = vadd.f32 %v3430_v36, %v765_v28 }
 0x19f   : > { %v815_v40 = vadd.f32 %v814_v23, %v766_v33 }
 0x1a0   : > { %v831_v32 = vpop.f32.mrf.mxu3 }
 0x1a1   : > { %v832_v34 = vadd.f32 %v831_v32, %v783_v30  ;;  %v842_v44 = vmax.f32 %v815_v40, 0.0 }
 0x1a3   : > { %v849_v38 = vmax.f32 %v832_v34, 0.0 }
 0x1a4   : > { %v767_v39 = vpop.f32.mrf.mxu1 }
 0x1a5   : > { %v2814_v41 = vpack.c.bf16 %v849_v38, %v848_v37  ;;  %v768_v42 = vadd.f32 %v3430_v36, %v767_v39 }
 0x1a7   : > { %2862 = vst [vmem:[#allocation2 + $0x38] sm:$0xff] %v2814_v41   ;;  %v817_v43 = vadd.f32 %v816_v35, %v768_v42 }
 0x1a9   : > { %v843_v45 = vmax.f32 %v817_v43, 0.0 }
 0x1ab   : > { %v2799_v46 = vpack.c.bf16 %v843_v45, %v842_v44 }
 0x1ac   : > { %v770_v48 = vpop.f32.mrf.mxu1 }
 0x1ad   : > { %2859 = vst [vmem:[#allocation2 + $0x8] sm:$0xff] %v2799_v46   ;;  %v771_v49 = vadd.f32 %v3430_v36, %v770_v48 }
 0x1af   : > { %v820_v51 = vadd.f32 %v819_v47, %v771_v49 }
 0x1b1   : > { %v844_v55 = vmax.f32 %v820_v51, 0.0 }
 0x1b4   : > { %v772_v50 = vpop.f32.mrf.mxu1 }
 0x1b5   : > { %v773_v52 = vadd.f32 %v3430_v36, %v772_v50 }
 0x1b7   : > { %v822_v54 = vadd.f32 %v821_v53, %v773_v52 }
 0x1b9   : > { %v845_v56 = vmax.f32 %v822_v54, 0.0 }
 0x1bb   : > { %v2804_v57 = vpack.c.bf16 %v845_v56, %v844_v55 }
 0x1bd   : > { %2860 = vst [vmem:[#allocation2 + $0x20] sm:$0xff] %v2804_v57  }
 0x1be PF: > { %p2329_p1 = scmp.ne.s32.totalorder %s3239_s18, 1 }
 0x1c0   : > { %887 = sbr.rel (%p2329_p1) target bundleno = 848 (0x350), region = 60 }
 0x1c5   : > { %v2711_v58 = vld [vmem:[#allocation2 + $0x38] sm:$0xff]  ;;  %v2710_v59 = vld [vmem:[#allocation2 + $0x28] sm:$0xff]  ;;  %v2709_v60 = vld [vmem:[#allocation2 + $0x20] sm:$0xff] }
 0x1c6   : > { %1016 = vmatpush.bf16.msra.mxu0 %v2711_v58  ;;  %2894 = vmatpush.bf16.msra.mxu3 %v2711_v58  ;;  %v2708_v36 = vld [vmem:[#allocation2 + $0x8] sm:$0xff]  ;;  %v2707_v61 = vld [vmem:[#allocation2 + $0x10] sm:$0xff]  ;;  %v2706_v62 = vld [vmem:[#allocation2 + $0x18] sm:$0xff] }
 0x1c7   : > { %v2705_v63 = vld [vmem:[#allocation2] sm:$0xff]  ;;  %v2704_v0 = vld [vmem:[#allocation2 + $0x30] sm:$0xff]  ;;  %v2697_v3 = vld [vmem:[#allocation4 + $0x8] sm:$0xff] }
 0x1c8   : > { %v2696_v1 = vld [vmem:[#allocation4] sm:$0xff]  ;;  %v2702_v2 = vld [vmem:[#allocation4 + $0x30] sm:$0xff]  ;;  %v2703_v4 = vld [vmem:[#allocation4 + $0x38] sm:$0xff] }
 0x1c9   : > { %v2698_v5 = vld [vmem:[#allocation4 + $0x10] sm:$0xff]  ;;  %v2699_v6 = vld [vmem:[#allocation4 + $0x18] sm:$0xff]  ;;  %v2733_v11 = vld [vmem:[%s3404_s11 + $0x68] sm:$0xff] }
 0x1ca   : > { %1017 = vmatpush.bf16.msra.mxu0 %v2710_v59  ;;  %2895 = vmatpush.bf16.msra.mxu3 %v2710_v59  ;;  %v2735_v7 = vld [vmem:[%s3404_s11 + $0x78] sm:$0xff]  ;;  %v2734_v9 = vld [vmem:[%s3404_s11 + $0x70] sm:$0xff]  ;;  %v2725_v12 = vld [vmem:[%s3404_s11 + $0x28] sm:$0xff] }
 0x1cb   : > { %v2727_v8 = vld [vmem:[%s3404_s11 + $0x38] sm:$0xff]  ;;  %1378 = vmatpush.bf16.msra.mxu2 %v2735_v7  ;;  %v2726_v10 = vld [vmem:[%s3404_s11 + $0x30] sm:$0xff]  ;;  %v2732_v13 = vld [vmem:[%s3404_s11 + $0x60] sm:$0xff] }
 0x1cc   : > { %1329 = vmatpush.bf16.msra.mxu1 %v2727_v8  ;;  %v2724_v14 = vld [vmem:[%s3404_s11 + $0x20] sm:$0xff]  ;;  %v2731_v16 = vld [vmem:[%s3404_s11 + $0x58] sm:$0xff]  ;;  %v2730_v17 = vld [vmem:[%s3404_s11 + $0x50] sm:$0xff] }
 0x1cd   : > { %v2700_v15 = vld [vmem:[#allocation4 + $0x20] sm:$0xff]  ;;  %v2729_v18 = vld [vmem:[%s3404_s11 + $0x48] sm:$0xff]  ;;  %v2723_v20 = vld [vmem:[%s3404_s11 + $0x18] sm:$0xff] }
 0x1ce   : > { %1018 = vmatpush.bf16.msra.mxu0 %v2709_v60  ;;  %2896 = vmatpush.bf16.msra.mxu3 %v2709_v60  ;;  %v2701_v19 = vld [vmem:[#allocation4 + $0x28] sm:$0xff]  ;;  %v2728_v21 = vld [vmem:[%s3404_s11 + $0x40] sm:$0xff]  ;;  %v2712_v22 = vld [vmem:[#allocation2 + $0x30] sm:$0xff] }
 0x1cf   : > { %1379 = vmatpush.bf16.msra.mxu2 %v2734_v9  ;;  %v2722_v23 = vld [vmem:[%s3404_s11 + $0x10] sm:$0xff]  ;;  %v2721_v24 = vld [vmem:[%s3404_s11 + $0x8] sm:$0xff]  ;;  %v2720_v25 = vld [vmem:[%s3404_s11] sm:$0xff] }
 0x1d0   : > { %1330 = vmatpush.bf16.msra.mxu1 %v2726_v10  ;;  %v2713_v26 = vld [vmem:[#allocation2] sm:$0xff]  ;;  %v2714_v28 = vld [vmem:[#allocation2 + $0x18] sm:$0xff]  ;;  %v2715_v43 = vld [vmem:[#allocation2 + $0x10] sm:$0xff] }
 0x1d1   : > { %v2716_v58 = vld [vmem:[#allocation2 + $0x8] sm:$0xff] }
 0x1d2   : > { %1019 = vmatpush.bf16.msra.mxu0 %v2708_v36  ;;  %2897 = vmatpush.bf16.msra.mxu3 %v2708_v36 }
 0x1d3   : > { %1380 = vmatpush.bf16.msra.mxu2 %v2733_v11 }
 0x1d4   : > { %1331 = vmatpush.bf16.msra.mxu1 %v2725_v12 }
 0x1d6   : > { %1020 = vmatpush.bf16.msra.mxu0 %v2707_v61  ;;  %2898 = vmatpush.bf16.msra.mxu3 %v2707_v61 }
 0x1d7   : > { %1381 = vmatpush.bf16.msra.mxu2 %v2732_v13 }
 0x1d8   : > { %1332 = vmatpush.bf16.msra.mxu1 %v2724_v14 }
 0x1da   : > { %1021 = vmatpush.bf16.msra.mxu0 %v2706_v62  ;;  %2899 = vmatpush.bf16.msra.mxu3 %v2706_v62 }
 0x1db   : > { %1382 = vmatpush.bf16.msra.mxu2 %v2731_v16 }
 0x1dc   : > { %1333 = vmatpush.bf16.msra.mxu1 %v2723_v20 }
 0x1de   : > { %1022 = vmatpush.bf16.msra.mxu0 %v2705_v63  ;;  %2900 = vmatpush.bf16.msra.mxu3 %v2705_v63 }
 0x1df   : > { %1383 = vmatpush.bf16.msra.mxu2 %v2730_v17 }
 0x1e0   : > { %1334 = vmatpush.bf16.msra.mxu1 %v2722_v23 }
 0x1e2   : > { %1023 = vmatpush.bf16.msra.mxu0 %v2704_v0  ;;  %2901 = vmatpush.bf16.msra.mxu3 %v2704_v0 }
 0x1e3   : > { %1384 = vmatpush.bf16.msra.mxu2 %v2729_v18 }
 0x1e4   : > { %1335 = vmatpush.bf16.msra.mxu1 %v2721_v24 }
 0x1e5   : > { %1024 = vmatmul.bf16.vlgmr.msra.gmra.mxu0 %v2696_v1  ;;  %1054 = vmatmul.bf16.vlgmr.msra.gmra.mxu3 %v2702_v2  ;;  %v2718_v2 = vld [vmem:[#allocation2 + $0x28] sm:$0xff] }
 0x1e6   : > { %2902 = vmatpush.bf16.msrb.mxu3 %v2727_v8 }
 0x1e7   : > { %1385 = vmatpush.bf16.msra.mxu2 %v2728_v21 }
 0x1e8   : > { %1336 = vmatpush.bf16.msra.mxu1 %v2720_v25 }
 0x1ea   : > { %2903 = vmatpush.bf16.msrb.mxu3 %v2726_v10  ;;  %1386 = vmatmul.bf16.vlgmr.msra.gmra.mxu2 %v2712_v22 }
 0x1ee   : > { %2904 = vmatpush.bf16.msrb.mxu3 %v2725_v12 }
 0x1f2   : > { %2905 = vmatpush.bf16.msrb.mxu3 %v2724_v14 }
 0x1f5   : > { %1029 = vmatmul.bf16.gmra.mxu0 %v2697_v3  ;;  %1059 = vmatmul.bf16.gmra.mxu3 %v2703_v4  ;;  %v2717_v3 = vld [vmem:[#allocation2 + $0x20] sm:$0xff] }
 0x1f6   : > { %2906 = vmatpush.bf16.msrb.mxu3 %v2723_v20 }
 0x1fa   : > { %2907 = vmatpush.bf16.msrb.mxu3 %v2722_v23  ;;  %1391 = vmatmul.bf16.gmra.mxu2 %v2713_v26 }
 0x1fe   : > { %2908 = vmatpush.bf16.msrb.mxu3 %v2721_v24 }
 0x202   : > { %2909 = vmatpush.bf16.msrb.mxu3 %v2720_v25 }
 0x205   : > { %1034 = vmatmul.bf16.gmra.mxu0 %v2698_v5 }
 0x206   : > { %2910 = vmatpush.bf16.msra.mxu3 %v2735_v7 }
 0x20a   : > { %2911 = vmatpush.bf16.msra.mxu3 %v2734_v9  ;;  %1396 = vmatmul.bf16.gmra.mxu2 %v2714_v28 }
 0x20e   : > { %2912 = vmatpush.bf16.msra.mxu3 %v2733_v11  ;;  %v2719_v11 = vld [vmem:[#allocation2 + $0x38] sm:$0xff] }
 0x212   : > { %2913 = vmatpush.bf16.msra.mxu3 %v2732_v13 }
 0x215   : > { %1039 = vmatmul.bf16.gmra.mxu0 %v2699_v6 }
 0x216   : > { %2914 = vmatpush.bf16.msra.mxu3 %v2731_v16 }
 0x21a   : > { %2915 = vmatpush.bf16.msra.mxu3 %v2730_v17  ;;  %1401 = vmatmul.bf16.gmra.mxu2 %v2715_v43 }
 0x21e   : > { %2916 = vmatpush.bf16.msra.mxu3 %v2729_v18 }
 0x222   : > { %2917 = vmatpush.bf16.msra.mxu3 %v2728_v21 }
 0x225   : > { %1044 = vmatmul.bf16.gmra.mxu0 %v2700_v15 }
 0x22a   : > { %1406 = vmatmul.bf16.gmra.mxu2 %v2716_v58 }
 0x235   : > { %1049 = vmatmul.bf16.gmra.mxu0 %v2701_v19 }
 0x23a   : > { %1411 = vmatmul.bf16.gmra.mxu2 %v2717_v3 }
 0x262   : > { %v1025_v27 = vpop.f32.mrf.mxu0 }
 0x263   : > { %v1065_v30 = vpack.c.bf16 %v1025_v27, %v1025_v27 }
 0x265   : > { %v1117_v33 = vunpack.c.l.b16 %v1065_v30 }
 0x268   : > { %v1055_v29 = vpop.f32.mrf.mxu3 }
 0x269   : > { %v1077_v34 = vpack.c.bf16 %v1055_v29, %v1055_v29  ;;  %v3466_v29 = vld [vmem:[%s3410_s25] ss:$0 sm:$0xff] }
 0x26a   : > { %v1027_v31 = vpop.f32.mrf.mxu0 }
 0x26b   : > { %v1066_v32 = vpack.c.bf16 %v1027_v31, %v1027_v31  ;;  %v1129_v39 = vunpack.c.l.b16 %v1077_v34 }
 0x26d   : > { %v1118_v35 = vunpack.c.l.b16 %v1066_v32  ;;  %v1387_v25 = vpop.f32.mrf.mxu2 }
 0x26f   : > { %v1133_v37 = vpack.c.b16 %v1118_v35, %v1117_v33 }
 0x270   : > { %v1057_v38 = vpop.f32.mrf.mxu3 }
 0x271   : > { %v1078_v40 = vpack.c.bf16 %v1057_v38, %v1057_v38  ;;  %1337 = vmatmul.bf16.vlgmr.msra.gmra.mxu1 %v1133_v37 }
 0x272   : > { %v1030_v41 = vpop.f32.mrf.mxu0 }
 0x273   : > { %v1130_v42 = vunpack.c.l.b16 %v1078_v40  ;;  %v1067_v46 = vpack.c.bf16 %v1030_v41, %v1030_v41 }
 0x275   : > { %v1139_v44 = vpack.c.b16 %v1130_v42, %v1129_v39  ;;  %v1119_v49 = vunpack.c.l.b16 %v1067_v46  ;;  %v1389_v26 = vpop.f32.mrf.mxu2 }
 0x277   : > { %1367 = vmatmul.bf16.vlgmr.msrb.gmra.mxu3 %v1139_v44 }
 0x278   : > { %v1060_v45 = vpop.f32.mrf.mxu3 }
 0x279   : > { %v1079_v50 = vpack.c.bf16 %v1060_v45, %v1060_v45 }
 0x27a   : > { %v1032_v47 = vpop.f32.mrf.mxu0 }
 0x27b   : > { %v1068_v48 = vpack.c.bf16 %v1032_v47, %v1032_v47  ;;  %v1131_v54 = vunpack.c.l.b16 %v1079_v50 }
 0x27d   : > { %v1120_v51 = vunpack.c.l.b16 %v1068_v48  ;;  %v1392_v28 = vpop.f32.mrf.mxu2 }
 0x27f   : > { %v1134_v52 = vpack.c.b16 %v1120_v51, %v1119_v49 }
 0x280   : > { %v1062_v53 = vpop.f32.mrf.mxu3 }
 0x281   : > { %v1080_v55 = vpack.c.bf16 %v1062_v53, %v1062_v53  ;;  %1342 = vmatmul.bf16.gmra.mxu1 %v1134_v52 }
 0x282   : > { %v1035_v56 = vpop.f32.mrf.mxu0 }
 0x283   : > { %v1132_v57 = vunpack.c.l.b16 %v1080_v55  ;;  %v1069_v60 = vpack.c.bf16 %v1035_v56, %v1035_v56 }
 0x285   : > { %v1140_v59 = vpack.c.b16 %v1132_v57, %v1131_v54  ;;  %v1121_v62 = vunpack.c.l.b16 %v1069_v60  ;;  %v1394_v34 = vpop.f32.mrf.mxu2 }
 0x287   : > { %1372 = vmatmul.bf16.gmra.mxu3 %v1140_v59 }
 0x28a   : > { %v1037_v36 = vpop.f32.mrf.mxu0 }
 0x28b   : > { %v1070_v61 = vpack.c.bf16 %v1037_v36, %v1037_v36 }
 0x28d   : > { %v1122_v63 = vunpack.c.l.b16 %v1070_v61  ;;  %v1397_v43 = vpop.f32.mrf.mxu2 }
 0x28f   : > { %v1135_v0 = vpack.c.b16 %v1122_v63, %v1121_v62 }
 0x291   : > { %1347 = vmatmul.bf16.gmra.mxu1 %v1135_v0 }
 0x292   : > { %v1040_v1 = vpop.f32.mrf.mxu0 }
 0x293   : > { %v1071_v4 = vpack.c.bf16 %v1040_v1, %v1040_v1 }
 0x295   : > { %v1123_v7 = vunpack.c.l.b16 %v1071_v4  ;;  %v1399_v52 = vpop.f32.mrf.mxu2 }
 0x297   : > { %1416 = vmatmul.bf16.vlgmr.msra.gmra.mxu3 %v2718_v2 }
 0x29a   : > { %v1042_v5 = vpop.f32.mrf.mxu0 }
 0x29b   : > { %v1072_v6 = vpack.c.bf16 %v1042_v5, %v1042_v5 }
 0x29d   : > { %v1124_v8 = vunpack.c.l.b16 %v1072_v6  ;;  %v1402_v58 = vpop.f32.mrf.mxu2 }
 0x29f   : > { %v1136_v9 = vpack.c.b16 %v1124_v8, %v1123_v7 }
 0x2a1   : > { %1352 = vmatmul.bf16.gmra.mxu1 %v1136_v9 }
 0x2a2   : > { %v1045_v10 = vpop.f32.mrf.mxu0 }
 0x2a3   : > { %v1073_v12 = vpack.c.bf16 %v1045_v10, %v1045_v10 }
 0x2a5   : > { %v1125_v15 = vunpack.c.l.b16 %v1073_v12  ;;  %v1404_v3 = vpop.f32.mrf.mxu2 }
 0x2a7   : > { %1421 = vmatmul.bf16.gmra.mxu3 %v2719_v11 }
 0x2aa   : > { %v1047_v13 = vpop.f32.mrf.mxu0 }
 0x2ab   : > { %v1074_v14 = vpack.c.bf16 %v1047_v13, %v1047_v13 }
 0x2ad   : > { %v1126_v16 = vunpack.c.l.b16 %v1074_v14 }
 0x2af   : > { %v1137_v17 = vpack.c.b16 %v1126_v16, %v1125_v15  ;;  %v1407_v16 = vpop.f32.mrf.mxu2 }
 0x2b1   : > { %1357 = vmatmul.bf16.gmra.mxu1 %v1137_v17 }
 0x2b2   : > { %v1050_v18 = vpop.f32.mrf.mxu0 }
 0x2b3   : > { %v1075_v19 = vpack.c.bf16 %v1050_v18, %v1050_v18 }
 0x2b5   : > { %v1127_v22 = vunpack.c.l.b16 %v1075_v19 }
 0x2ba   : > { %v1052_v20 = vpop.f32.mrf.mxu0 }
 0x2bb   : > { %v1076_v21 = vpack.c.bf16 %v1052_v20, %v1052_v20 }
 0x2bd   : > { %v1128_v23 = vunpack.c.l.b16 %v1076_v21 }
 0x2bf   : > { %v1138_v24 = vpack.c.b16 %v1128_v23, %v1127_v22 }
 0x2c1   : > { %1362 = vmatmul.bf16.gmra.mxu1 %v1138_v24 }
 0x2ee   : > { %v1338_v27 = vpop.f32.mrf.mxu1 }
 0x2ef   : > { %v1339_v30 = vadd.f32 %v3466_v29, %v1338_v27 }
 0x2f1   : > { %v1388_v32 = vadd.f32 %v1387_v25, %v1339_v30 }
 0x2f3   : > { %v1427_v38 = vmax.f32 %v1388_v32, 0.0 }
 0x2f6   : > { %v1340_v31 = vpop.f32.mrf.mxu1 }
 0x2f7   : > { %v1341_v33 = vadd.f32 %v3466_v29, %v1340_v31 }
 0x2f9   : > { %v1390_v35 = vadd.f32 %v1389_v26, %v1341_v33 }
 0x2fa   : > { %v1368_v37 = vpop.f32.mrf.mxu3 }
 0x2fb   : > { %v1428_v39 = vmax.f32 %v1390_v35, 0.0  ;;  %v1369_v2 = vadd.f32 %v3466_v29, %v1368_v37 }
 0x2fd   : > { %v2819_v40 = vpack.c.bf16 %v1428_v39, %v1427_v38 }
 0x2fe   : > { %v1343_v41 = vpop.f32.mrf.mxu1 }
 0x2ff   : > { %2820 = vst [vmem:[#allocation3] sm:$0xff] %v2819_v40   ;;  %v1344_v44 = vadd.f32 %v3466_v29, %v1343_v41 }
 0x301   : > { %v1393_v46 = vadd.f32 %v1392_v28, %v1344_v44  ;;  %v1409_v28 = vpop.f32.mrf.mxu2 }
 0x302   : > { %v1370_v42 = vpop.f32.mrf.mxu3 }
 0x303   : > { %v1429_v50 = vmax.f32 %v1393_v46, 0.0  ;;  %v1371_v4 = vadd.f32 %v3466_v29, %v1370_v42 }
 0x306   : > { %v1345_v45 = vpop.f32.mrf.mxu1 }
 0x307   : > { %v1346_v47 = vadd.f32 %v3466_v29, %v1345_v45 }
 0x309   : > { %v1395_v48 = vadd.f32 %v1394_v34, %v1346_v47  ;;  %v1412_v41 = vpop.f32.mrf.mxu2 }
 0x30a   : > { %v1373_v49 = vpop.f32.mrf.mxu3 }
 0x30b   : > { %v1430_v51 = vmax.f32 %v1395_v48, 0.0  ;;  %v1374_v22 = vadd.f32 %v3466_v29, %v1373_v49 }
 0x30d   : > { %v2824_v53 = vpack.c.bf16 %v1430_v51, %v1429_v50 }
 0x30e   : > { %v1348_v54 = vpop.f32.mrf.mxu1 }
 0x30f   : > { %2863 = vst [vmem:[#allocation3 + $0x18] sm:$0xff] %v2824_v53   ;;  %v1349_v56 = vadd.f32 %v3466_v29, %v1348_v54 }
 0x311   : > { %v1398_v59 = vadd.f32 %v1397_v43, %v1349_v56  ;;  %v1414_v47 = vpop.f32.mrf.mxu2 }
 0x312   : > { %v1375_v55 = vpop.f32.mrf.mxu3 }
 0x313   : > { %v1431_v62 = vmax.f32 %v1398_v59, 0.0  ;;  %v1376_v23 = vadd.f32 %v3466_v29, %v1375_v55 }
 0x316   : > { %v1350_v57 = vpop.f32.mrf.mxu1 }
 0x317   : > { %v1351_v60 = vadd.f32 %v3466_v29, %v1350_v57 }
 0x319   : > { %v1400_v36 = vadd.f32 %v1399_v52, %v1351_v60 }
 0x31a   : > { %v1417_v61 = vpop.f32.mrf.mxu3 }
 0x31b   : > { %v1432_v63 = vmax.f32 %v1400_v36, 0.0  ;;  %v1418_v5 = vadd.f32 %v1417_v61, %v1369_v2 }
 0x31d   : > { %v2829_v0 = vpack.c.bf16 %v1432_v63, %v1431_v62  ;;  %v1439_v9 = vmax.f32 %v1418_v5, 0.0 }
 0x31e   : > { %v1353_v1 = vpop.f32.mrf.mxu1 }
 0x31f   : > { %2864 = vst [vmem:[#allocation3 + $0x10] sm:$0xff] %v2829_v0   ;;  %v1354_v7 = vadd.f32 %v3466_v29, %v1353_v1 }
 0x321   : > { %v1403_v12 = vadd.f32 %v1402_v58, %v1354_v7 }
 0x322   : > { %v1419_v6 = vpop.f32.mrf.mxu3 }
 0x323   : > { %v1420_v8 = vadd.f32 %v1419_v6, %v1371_v4  ;;  %v1433_v18 = vmax.f32 %v1403_v12, 0.0 }
 0x325   : > { %v1440_v10 = vmax.f32 %v1420_v8, 0.0 }
 0x326   : > { %v1355_v11 = vpop.f32.mrf.mxu1 }
 0x327   : > { %v2849_v13 = vpack.c.bf16 %v1440_v10, %v1439_v9  ;;  %v1356_v14 = vadd.f32 %v3466_v29, %v1355_v11 }
 0x329   : > { %2868 = vst [vmem:[#allocation3 + $0x30] sm:$0xff] %v2849_v13   ;;  %v1405_v15 = vadd.f32 %v1404_v3, %v1356_v14 }
 0x32a   : > { %v1422_v17 = vpop.f32.mrf.mxu3 }
 0x32b   : > { %v1434_v19 = vmax.f32 %v1405_v15, 0.0  ;;  %v1423_v24 = vadd.f32 %v1422_v17, %v1374_v22 }
 0x32d   : > { %v2834_v20 = vpack.c.bf16 %v1434_v19, %v1433_v18  ;;  %v1441_v30 = vmax.f32 %v1423_v24, 0.0 }
 0x32e   : > { %v1358_v21 = vpop.f32.mrf.mxu1 }
 0x32f   : > { %2865 = vst [vmem:[#allocation3 + $0x20] sm:$0xff] %v2834_v20   ;;  %v1359_v26 = vadd.f32 %v3466_v29, %v1358_v21 }
 0x331   : > { %v1408_v33 = vadd.f32 %v1407_v16, %v1359_v26 }
 0x332   : > { %v1424_v25 = vpop.f32.mrf.mxu3 }
 0x333   : > { %v1425_v27 = vadd.f32 %v1424_v25, %v1376_v23  ;;  %v1435_v38 = vmax.f32 %v1408_v33, 0.0 }
 0x335   : > { %v1442_v31 = vmax.f32 %v1425_v27, 0.0 }
 0x336   : > { %v1360_v32 = vpop.f32.mrf.mxu1 }
 0x337   : > { %v2854_v34 = vpack.c.bf16 %v1442_v31, %v1441_v30  ;;  %v1361_v35 = vadd.f32 %v3466_v29, %v1360_v32 }
 0x339   : > { %2869 = vst [vmem:[#allocation3 + $0x38] sm:$0xff] %v2854_v34   ;;  %v1410_v37 = vadd.f32 %v1409_v28, %v1361_v35 }
 0x33b   : > { %v1436_v39 = vmax.f32 %v1410_v37, 0.0 }
 0x33d   : > { %v2839_v40 = vpack.c.bf16 %v1436_v39, %v1435_v38 }
 0x33e   : > { %v1363_v42 = vpop.f32.mrf.mxu1 }
 0x33f   : > { %2866 = vst [vmem:[#allocation3 + $0x28] sm:$0xff] %v2839_v40   ;;  %v1364_v43 = vadd.f32 %v3466_v29, %v1363_v42 }
 0x341   : > { %v1413_v45 = vadd.f32 %v1412_v41, %v1364_v43 }
 0x343   : > { %v1437_v49 = vmax.f32 %v1413_v45, 0.0 }
 0x346   : > { %v1365_v44 = vpop.f32.mrf.mxu1 }
 0x347   : > { %v1366_v46 = vadd.f32 %v3466_v29, %v1365_v44 }
 0x349   : > { %v1415_v48 = vadd.f32 %v1414_v47, %v1366_v46 }
 0x34b   : > { %v1438_v50 = vmax.f32 %v1415_v48, 0.0 }
 0x34d   : > { %v2844_v51 = vpack.c.bf16 %v1438_v50, %v1437_v49 }
 0x34f   : > { %2867 = vst [vmem:[#allocation3 + $0x8] sm:$0xff] %v2844_v51  }
 0x350 PF: > { %p2490_p3 = scmp.ne.s32.totalorder %s3239_s18, 2 }
 0x352   : > { %1480 = sbr.rel (%p2490_p3) target bundleno = 1246 (0x4de), region = 64 }
 0x357   : > { %v2751_v52 = vld [vmem:[#allocation3 + $0x38] sm:$0xff]  ;;  %v2750_v53 = vld [vmem:[#allocation3 + $0x30] sm:$0xff]  ;;  %v2749_v54 = vld [vmem:[#allocation3 + $0x8] sm:$0xff] }
 0x358   : > { %1609 = vmatpush.bf16.msra.mxu0 %v2751_v52  ;;  %2918 = vmatpush.bf16.msra.mxu3 %v2751_v52  ;;  %v2748_v29 = vld [vmem:[#allocation3 + $0x28] sm:$0xff]  ;;  %v2747_v55 = vld [vmem:[#allocation3 + $0x20] sm:$0xff]  ;;  %v2746_v56 = vld [vmem:[#allocation3 + $0x10] sm:$0xff] }
 0x359   : > { %v2745_v57 = vld [vmem:[#allocation3 + $0x18] sm:$0xff]  ;;  %v2744_v58 = vld [vmem:[#allocation3] sm:$0xff]  ;;  %v2742_v60 = vld [vmem:[#allocation4 + $0x30] sm:$0xff] }
 0x35a   : > { %v2736_v59 = vld [vmem:[#allocation4] sm:$0xff]  ;;  %v2737_v36 = vld [vmem:[#allocation4 + $0x8] sm:$0xff]  ;;  %v2743_v61 = vld [vmem:[#allocation4 + $0x38] sm:$0xff] }
 0x35b   : > { %v2738_v62 = vld [vmem:[#allocation4 + $0x10] sm:$0xff]  ;;  %v2739_v63 = vld [vmem:[#allocation4 + $0x18] sm:$0xff]  ;;  %v2773_v4 = vld [vmem:[%s3404_s11 + $0x68] sm:$0xff] }
 0x35c   : > { %1610 = vmatpush.bf16.msra.mxu0 %v2750_v53  ;;  %2919 = vmatpush.bf16.msra.mxu3 %v2750_v53  ;;  %v2775_v0 = vld [vmem:[%s3404_s11 + $0x78] sm:$0xff]  ;;  %v2774_v2 = vld [vmem:[%s3404_s11 + $0x70] sm:$0xff]  ;;  %v2765_v5 = vld [vmem:[%s3404_s11 + $0x28] sm:$0xff] }
 0x35d   : > { %v2767_v1 = vld [vmem:[%s3404_s11 + $0x38] sm:$0xff]  ;;  %1971 = vmatpush.bf16.msra.mxu2 %v2775_v0  ;;  %v2766_v3 = vld [vmem:[%s3404_s11 + $0x30] sm:$0xff]  ;;  %v2772_v6 = vld [vmem:[%s3404_s11 + $0x60] sm:$0xff] }
 0x35e   : > { %1922 = vmatpush.bf16.msra.mxu1 %v2767_v1  ;;  %v2764_v7 = vld [vmem:[%s3404_s11 + $0x20] sm:$0xff]  ;;  %v2771_v9 = vld [vmem:[%s3404_s11 + $0x58] sm:$0xff]  ;;  %v2770_v10 = vld [vmem:[%s3404_s11 + $0x50] sm:$0xff] }
 0x35f   : > { %v2740_v8 = vld [vmem:[#allocation4 + $0x20] sm:$0xff]  ;;  %v2769_v11 = vld [vmem:[%s3404_s11 + $0x48] sm:$0xff]  ;;  %v2763_v13 = vld [vmem:[%s3404_s11 + $0x18] sm:$0xff] }
 0x360   : > { %1611 = vmatpush.bf16.msra.mxu0 %v2749_v54  ;;  %2920 = vmatpush.bf16.msra.mxu3 %v2749_v54  ;;  %v2741_v12 = vld [vmem:[#allocation4 + $0x28] sm:$0xff]  ;;  %v2768_v14 = vld [vmem:[%s3404_s11 + $0x40] sm:$0xff]  ;;  %v2762_v16 = vld [vmem:[%s3404_s11 + $0x10] sm:$0xff] }
 0x361   : > { %1972 = vmatpush.bf16.msra.mxu2 %v2774_v2  ;;  %v2752_v15 = vld [vmem:[#allocation3] sm:$0xff]  ;;  %v2761_v17 = vld [vmem:[%s3404_s11 + $0x8] sm:$0xff]  ;;  %v2753_v19 = vld [vmem:[#allocation3 + $0x18] sm:$0xff] }
 0x362   : > { %1923 = vmatpush.bf16.msra.mxu1 %v2766_v3  ;;  %v2760_v18 = vld [vmem:[%s3404_s11] sm:$0xff]  ;;  %v2754_v21 = vld [vmem:[#allocation3 + $0x10] sm:$0xff]  ;;  %v2756_v52 = vld [vmem:[#allocation3 + $0x28] sm:$0xff] }
 0x363   : > { %v2755_v37 = vld [vmem:[#allocation3 + $0x20] sm:$0xff] }
 0x364   : > { %1612 = vmatpush.bf16.msra.mxu0 %v2748_v29  ;;  %2921 = vmatpush.bf16.msra.mxu3 %v2748_v29 }
 0x365   : > { %1973 = vmatpush.bf16.msra.mxu2 %v2773_v4 }
 0x366   : > { %1924 = vmatpush.bf16.msra.mxu1 %v2765_v5 }
 0x368   : > { %1613 = vmatpush.bf16.msra.mxu0 %v2747_v55  ;;  %2922 = vmatpush.bf16.msra.mxu3 %v2747_v55 }
 0x369   : > { %1974 = vmatpush.bf16.msra.mxu2 %v2772_v6 }
 0x36a   : > { %1925 = vmatpush.bf16.msra.mxu1 %v2764_v7 }
 0x36c   : > { %1614 = vmatpush.bf16.msra.mxu0 %v2746_v56  ;;  %2923 = vmatpush.bf16.msra.mxu3 %v2746_v56 }
 0x36d   : > { %1975 = vmatpush.bf16.msra.mxu2 %v2771_v9 }
 0x36e   : > { %1926 = vmatpush.bf16.msra.mxu1 %v2763_v13 }
 0x370   : > { %1615 = vmatpush.bf16.msra.mxu0 %v2745_v57  ;;  %2924 = vmatpush.bf16.msra.mxu3 %v2745_v57 }
 0x371   : > { %1976 = vmatpush.bf16.msra.mxu2 %v2770_v10 }
 0x372   : > { %1927 = vmatpush.bf16.msra.mxu1 %v2762_v16 }
 0x374   : > { %1616 = vmatpush.bf16.msra.mxu0 %v2744_v58  ;;  %2925 = vmatpush.bf16.msra.mxu3 %v2744_v58 }
 0x375   : > { %1977 = vmatpush.bf16.msra.mxu2 %v2769_v11 }
 0x376   : > { %1928 = vmatpush.bf16.msra.mxu1 %v2761_v17 }
 0x377   : > { %1617 = vmatmul.bf16.vlgmr.msra.gmra.mxu0 %v2736_v59  ;;  %1647 = vmatmul.bf16.vlgmr.msra.gmra.mxu3 %v2742_v60  ;;  %v2758_v60 = vld [vmem:[#allocation3 + $0x30] sm:$0xff] }
 0x378   : > { %2926 = vmatpush.bf16.msrb.mxu3 %v2767_v1 }
 0x379   : > { %1978 = vmatpush.bf16.msra.mxu2 %v2768_v14 }
 0x37a   : > { %1929 = vmatpush.bf16.msra.mxu1 %v2760_v18 }
 0x37c   : > { %2927 = vmatpush.bf16.msrb.mxu3 %v2766_v3  ;;  %1979 = vmatmul.bf16.vlgmr.msra.gmra.mxu2 %v2752_v15 }
 0x380   : > { %2928 = vmatpush.bf16.msrb.mxu3 %v2765_v5 }
 0x384   : > { %2929 = vmatpush.bf16.msrb.mxu3 %v2764_v7 }
 0x387   : > { %1622 = vmatmul.bf16.gmra.mxu0 %v2737_v36  ;;  %1652 = vmatmul.bf16.gmra.mxu3 %v2743_v61  ;;  %v2757_v36 = vld [vmem:[#allocation3 + $0x8] sm:$0xff] }
 0x388   : > { %2930 = vmatpush.bf16.msrb.mxu3 %v2763_v13 }
 0x38c   : > { %2931 = vmatpush.bf16.msrb.mxu3 %v2762_v16  ;;  %1984 = vmatmul.bf16.gmra.mxu2 %v2753_v19 }
 0x390   : > { %2932 = vmatpush.bf16.msrb.mxu3 %v2761_v17 }
 0x394   : > { %2933 = vmatpush.bf16.msrb.mxu3 %v2760_v18 }
 0x397   : > { %1627 = vmatmul.bf16.gmra.mxu0 %v2738_v62 }
 0x398   : > { %2934 = vmatpush.bf16.msra.mxu3 %v2775_v0 }
 0x39c   : > { %2935 = vmatpush.bf16.msra.mxu3 %v2774_v2  ;;  %1989 = vmatmul.bf16.gmra.mxu2 %v2754_v21 }
 0x3a0   : > { %2936 = vmatpush.bf16.msra.mxu3 %v2773_v4  ;;  %v2759_v4 = vld [vmem:[#allocation3 + $0x38] sm:$0xff] }
 0x3a4   : > { %2937 = vmatpush.bf16.msra.mxu3 %v2772_v6 }
 0x3a7   : > { %1632 = vmatmul.bf16.gmra.mxu0 %v2739_v63 }
 0x3a8   : > { %2938 = vmatpush.bf16.msra.mxu3 %v2771_v9 }
 0x3ac   : > { %2939 = vmatpush.bf16.msra.mxu3 %v2770_v10  ;;  %1994 = vmatmul.bf16.gmra.mxu2 %v2755_v37 }
 0x3b0   : > { %2940 = vmatpush.bf16.msra.mxu3 %v2769_v11 }
 0x3b4   : > { %2941 = vmatpush.bf16.msra.mxu3 %v2768_v14 }
 0x3b7   : > { %1637 = vmatmul.bf16.gmra.mxu0 %v2740_v8 }
 0x3bc   : > { %1999 = vmatmul.bf16.gmra.mxu2 %v2756_v52 }
 0x3c7   : > { %1642 = vmatmul.bf16.gmra.mxu0 %v2741_v12 }
 0x3cc   : > { %2004 = vmatmul.bf16.gmra.mxu2 %v2757_v36 }
 0x3f4   : > { %v1618_v20 = vpop.f32.mrf.mxu0 }
 0x3f5   : > { %v1658_v23 = vpack.c.bf16 %v1618_v20, %v1618_v20  ;;  %v3502_v20 = vld [vmem:[%s3410_s25] ss:$0 sm:$0xff] }
 0x3f7   : > { %v1710_v26 = vunpack.c.l.b16 %v1658_v23 }
 0x3fa   : > { %v1648_v22 = vpop.f32.mrf.mxu3 }
 0x3fb   : > { %v1670_v27 = vpack.c.bf16 %v1648_v22, %v1648_v22 }
 0x3fc   : > { %v1620_v24 = vpop.f32.mrf.mxu0 }
 0x3fd   : > { %v1659_v25 = vpack.c.bf16 %v1620_v24, %v1620_v24  ;;  %v1722_v32 = vunpack.c.l.b16 %v1670_v27 }
 0x3ff   : > { %v1711_v28 = vunpack.c.l.b16 %v1659_v25  ;;  %v1980_v18 = vpop.f32.mrf.mxu2 }
 0x401   : > { %v1726_v30 = vpack.c.b16 %v1711_v28, %v1710_v26 }
 0x402   : > { %v1650_v31 = vpop.f32.mrf.mxu3 }
 0x403   : > { %v1671_v33 = vpack.c.bf16 %v1650_v31, %v1650_v31  ;;  %1930 = vmatmul.bf16.vlgmr.msra.gmra.mxu1 %v1726_v30 }
 0x404   : > { %v1623_v34 = vpop.f32.mrf.mxu0 }
 0x405   : > { %v1723_v35 = vunpack.c.l.b16 %v1671_v33  ;;  %v1660_v40 = vpack.c.bf16 %v1623_v34, %v1623_v34 }
 0x407   : > { %v1732_v38 = vpack.c.b16 %v1723_v35, %v1722_v32  ;;  %v1712_v43 = vunpack.c.l.b16 %v1660_v40  ;;  %v1982_v19 = vpop.f32.mrf.mxu2 }
 0x409   : > { %1960 = vmatmul.bf16.vlgmr.msrb.gmra.mxu3 %v1732_v38 }
 0x40a   : > { %v1653_v39 = vpop.f32.mrf.mxu3 }
 0x40b   : > { %v1672_v44 = vpack.c.bf16 %v1653_v39, %v1653_v39 }
 0x40c   : > { %v1625_v41 = vpop.f32.mrf.mxu0 }
 0x40d   : > { %v1661_v42 = vpack.c.bf16 %v1625_v41, %v1625_v41  ;;  %v1724_v48 = vunpack.c.l.b16 %v1672_v44 }
 0x40f   : > { %v1713_v45 = vunpack.c.l.b16 %v1661_v42  ;;  %v1985_v22 = vpop.f32.mrf.mxu2 }
 0x411   : > { %v1727_v46 = vpack.c.b16 %v1713_v45, %v1712_v43 }
 0x412   : > { %v1655_v47 = vpop.f32.mrf.mxu3 }
 0x413   : > { %v1673_v49 = vpack.c.bf16 %v1655_v47, %v1655_v47  ;;  %1935 = vmatmul.bf16.gmra.mxu1 %v1727_v46 }
 0x414   : > { %v1628_v50 = vpop.f32.mrf.mxu0 }
 0x415   : > { %v1725_v51 = vunpack.c.l.b16 %v1673_v49  ;;  %v1662_v54 = vpack.c.bf16 %v1628_v50, %v1628_v50 }
 0x417   : > { %v1733_v53 = vpack.c.b16 %v1725_v51, %v1724_v48  ;;  %v1714_v56 = vunpack.c.l.b16 %v1662_v54  ;;  %v1987_v27 = vpop.f32.mrf.mxu2 }
 0x419   : > { %1965 = vmatmul.bf16.gmra.mxu3 %v1733_v53 }
 0x41c   : > { %v1630_v29 = vpop.f32.mrf.mxu0 }
 0x41d   : > { %v1663_v55 = vpack.c.bf16 %v1630_v29, %v1630_v29 }
 0x41f   : > { %v1715_v57 = vunpack.c.l.b16 %v1663_v55  ;;  %v1990_v35 = vpop.f32.mrf.mxu2 }
 0x421   : > { %v1728_v58 = vpack.c.b16 %v1715_v57, %v1714_v56 }
 0x423   : > { %1940 = vmatmul.bf16.gmra.mxu1 %v1728_v58 }
 0x424   : > { %v1633_v59 = vpop.f32.mrf.mxu0 }
 0x425   : > { %v1664_v61 = vpack.c.bf16 %v1633_v59, %v1633_v59 }
 0x427   : > { %v1716_v0 = vunpack.c.l.b16 %v1664_v61  ;;  %v1992_v41 = vpop.f32.mrf.mxu2 }
 0x429   : > { %2009 = vmatmul.bf16.vlgmr.msra.gmra.mxu3 %v2758_v60 }
 0x42c   : > { %v1635_v62 = vpop.f32.mrf.mxu0 }
 0x42d   : > { %v1665_v63 = vpack.c.bf16 %v1635_v62, %v1635_v62 }
 0x42f   : > { %v1717_v1 = vunpack.c.l.b16 %v1665_v63  ;;  %v1995_v47 = vpop.f32.mrf.mxu2 }
 0x431   : > { %v1729_v2 = vpack.c.b16 %v1717_v1, %v1716_v0 }
 0x433   : > { %1945 = vmatmul.bf16.gmra.mxu1 %v1729_v2 }
 0x434   : > { %v1638_v3 = vpop.f32.mrf.mxu0 }
 0x435   : > { %v1666_v5 = vpack.c.bf16 %v1638_v3, %v1638_v3 }
 0x437   : > { %v1718_v8 = vunpack.c.l.b16 %v1666_v5  ;;  %v1997_v29 = vpop.f32.mrf.mxu2 }
 0x439   : > { %2014 = vmatmul.bf16.gmra.mxu3 %v2759_v4 }
 0x43c   : > { %v1640_v6 = vpop.f32.mrf.mxu0 }
 0x43d   : > { %v1667_v7 = vpack.c.bf16 %v1640_v6, %v1640_v6 }
 0x43f   : > { %v1719_v9 = vunpack.c.l.b16 %v1667_v7  ;;  %v2000_v62 = vpop.f32.mrf.mxu2 }
 0x441   : > { %v1730_v10 = vpack.c.b16 %v1719_v9, %v1718_v8 }
 0x443   : > { %1950 = vmatmul.bf16.gmra.mxu1 %v1730_v10 }
 0x444   : > { %v1643_v11 = vpop.f32.mrf.mxu0 }
 0x445   : > { %v1668_v12 = vpack.c.bf16 %v1643_v11, %v1643_v11 }
 0x447   : > { %v1720_v15 = vunpack.c.l.b16 %v1668_v12  ;;  %v2002_v7 = vpop.f32.mrf.mxu2 }
 0x44c   : > { %v1645_v13 = vpop.f32.mrf.mxu0 }
 0x44d   : > { %v1669_v14 = vpack.c.bf16 %v1645_v13, %v1645_v13 }
 0x44f   : > { %v1721_v16 = vunpack.c.l.b16 %v1669_v14  ;;  %v2005_v11 = vpop.f32.mrf.mxu2 }
 0x451   : > { %v1731_v17 = vpack.c.b16 %v1721_v16, %v1720_v15 }
 0x453   : > { %1955 = vmatmul.bf16.gmra.mxu1 %v1731_v17 }
 0x457   : > { %v2007_v17 = vpop.f32.mrf.mxu2 }
 0x480   : > { %v1931_v21 = vpop.f32.mrf.mxu1 }
 0x481   : > { %v1932_v23 = vadd.f32 %v3502_v20, %v1931_v21 }
 0x483   : > { %v1981_v24 = vadd.f32 %v1980_v18, %v1932_v23 }
 0x485   : > { %2021 = vst [vmem:[#allocation11] sm:$0xff] %v1981_v24 }
 0x488   : > { %v1933_v25 = vpop.f32.mrf.mxu1 }
 0x489   : > { %v1934_v26 = vadd.f32 %v3502_v20, %v1933_v25 }
 0x48b   : > { %v1983_v28 = vadd.f32 %v1982_v19, %v1934_v26 }
 0x48c   : > { %v1961_v30 = vpop.f32.mrf.mxu3 }
 0x48d   : > { %2022 = vst [vmem:[#allocation11 + $0x8] sm:$0xff] %v1983_v28  ;;  %v1962_v49 = vadd.f32 %v3502_v20, %v1961_v30 }
 0x490   : > { %v1936_v31 = vpop.f32.mrf.mxu1 }
 0x491   : > { %v1937_v32 = vadd.f32 %v3502_v20, %v1936_v31 }
 0x493   : > { %v1986_v33 = vadd.f32 %v1985_v22, %v1937_v32 }
 0x494   : > { %v1963_v34 = vpop.f32.mrf.mxu3 }
 0x495   : > { %2023 = vst [vmem:[#allocation11 + $0x10] sm:$0xff] %v1986_v33  ;;  %v1964_v55 = vadd.f32 %v3502_v20, %v1963_v34 }
 0x498   : > { %v1938_v37 = vpop.f32.mrf.mxu1 }
 0x499   : > { %v1939_v38 = vadd.f32 %v3502_v20, %v1938_v37 }
 0x49b   : > { %v1988_v39 = vadd.f32 %v1987_v27, %v1939_v38 }
 0x49c   : > { %v1966_v40 = vpop.f32.mrf.mxu3 }
 0x49d   : > { %2024 = vst [vmem:[#allocation11 + $0x18] sm:$0xff] %v1988_v39  ;;  %v1967_v36 = vadd.f32 %v3502_v20, %v1966_v40 }
 0x4a0   : > { %v1941_v42 = vpop.f32.mrf.mxu1 }
 0x4a1   : > { %v1942_v43 = vadd.f32 %v3502_v20, %v1941_v42 }
 0x4a3   : > { %v1991_v44 = vadd.f32 %v1990_v35, %v1942_v43 }
 0x4a4   : > { %v1968_v45 = vpop.f32.mrf.mxu3 }
 0x4a5   : > { %2025 = vst [vmem:[#allocation11 + $0x20] sm:$0xff] %v1991_v44  ;;  %v1969_v3 = vadd.f32 %v3502_v20, %v1968_v45 }
 0x4a8   : > { %v1943_v46 = vpop.f32.mrf.mxu1 }
 0x4a9   : > { %v1944_v48 = vadd.f32 %v3502_v20, %v1943_v46 }
 0x4ab   : > { %v1993_v50 = vadd.f32 %v1992_v41, %v1944_v48 }
 0x4ac   : > { %v2010_v51 = vpop.f32.mrf.mxu3 }
 0x4ad   : > { %2026 = vst [vmem:[#allocation11 + $0x28] sm:$0xff] %v1993_v50  ;;  %v2011_v52 = vadd.f32 %v2010_v51, %v1962_v49 }
 0x4af   : > { %2033 = vst [vmem:[#allocation11 + $0x60] sm:$0xff] %v2011_v52 }
 0x4b0   : > { %v1946_v53 = vpop.f32.mrf.mxu1 }
 0x4b1   : > { %v1947_v54 = vadd.f32 %v3502_v20, %v1946_v53 }
 0x4b3   : > { %v1996_v56 = vadd.f32 %v1995_v47, %v1947_v54 }
 0x4b4   : > { %v2012_v57 = vpop.f32.mrf.mxu3 }
 0x4b5   : > { %2027 = vst [vmem:[#allocation11 + $0x30] sm:$0xff] %v1996_v56  ;;  %v2013_v58 = vadd.f32 %v2012_v57, %v1964_v55 }
 0x4b7   : > { %2034 = vst [vmem:[#allocation11 + $0x68] sm:$0xff] %v2013_v58 }
 0x4b8   : > { %v1948_v59 = vpop.f32.mrf.mxu1 }
 0x4b9   : > { %v1949_v60 = vadd.f32 %v3502_v20, %v1948_v59 }
 0x4bb   : > { %v1998_v61 = vadd.f32 %v1997_v29, %v1949_v60 }
 0x4bc   : > { %v2015_v63 = vpop.f32.mrf.mxu3 }
 0x4bd   : > { %2028 = vst [vmem:[#allocation11 + $0x38] sm:$0xff] %v1998_v61  ;;  %v2016_v0 = vadd.f32 %v2015_v63, %v1967_v36 }
 0x4bf   : > { %2035 = vst [vmem:[#allocation11 + $0x70] sm:$0xff] %v2016_v0 }
 0x4c0   : > { %v1951_v1 = vpop.f32.mrf.mxu1 }
 0x4c1   : > { %v1952_v2 = vadd.f32 %v3502_v20, %v1951_v1 }
 0x4c3   : > { %v2001_v4 = vadd.f32 %v2000_v62, %v1952_v2 }
 0x4c4   : > { %v2017_v5 = vpop.f32.mrf.mxu3 }
 0x4c5   : > { %2029 = vst [vmem:[#allocation11 + $0x40] sm:$0xff] %v2001_v4  ;;  %v2018_v6 = vadd.f32 %v2017_v5, %v1969_v3 }
 0x4c7   : > { %2036 = vst [vmem:[#allocation11 + $0x78] sm:$0xff] %v2018_v6 }
 0x4c8   : > { %v1953_v8 = vpop.f32.mrf.mxu1 }
 0x4c9   : > { %v1954_v9 = vadd.f32 %v3502_v20, %v1953_v8 }
 0x4cb   : > { %v2003_v10 = vadd.f32 %v2002_v7, %v1954_v9 }
 0x4cd   : > { %2030 = vst [vmem:[#allocation11 + $0x48] sm:$0xff] %v2003_v10 }
 0x4d0   : > { %v1956_v12 = vpop.f32.mrf.mxu1 }
 0x4d1   : > { %v1957_v13 = vadd.f32 %v3502_v20, %v1956_v12 }
 0x4d3   : > { %v2006_v14 = vadd.f32 %v2005_v11, %v1957_v13 }
 0x4d5   : > { %2031 = vst [vmem:[#allocation11 + $0x50] sm:$0xff] %v2006_v14 }
 0x4d8   : > { %v1958_v15 = vpop.f32.mrf.mxu1 }
 0x4d9   : > { %v1959_v16 = vadd.f32 %v3502_v20, %v1958_v15 }
 0x4db   : > { %v2008_v18 = vadd.f32 %v2007_v17, %v1959_v16 }
 0x4dd   : > { %2032 = vst [vmem:[#allocation11 + $0x58] sm:$0xff] %v2008_v18 }
 0x4de PF: > { %p2977_p4 = scmp.eq.s32.totalorder %s3310_s21, 2  ;;  %s2044_s28 = sshll.u32 %s3546_s4, 4  ;;  %s2045_s28 = int_to_ptr.hbm [resolvable:$true] %s2044_s28 }
 0x4df   : > { %s3253_s9 = smov [#allocation11]   ;;  %s3254_s12 = smov 128  }
 0x4e0   : > { %s2042_s15 = sshll.u32 %s3253_s9, 4  ;;  %s3255_s23 = smov 8   ;;  %s2043_s15 = int_to_ptr.vmem [resolvable:$true] %s2042_s15 }
 0x4e1   : > { %2955 = dma.vmem_to_hbm [thread:$0]  (%p2977_p4), %s2043_s15, 2048, %s2045_s28, [#allocation6], %s3254_s12, %s3254_s12, %s3255_s23  }
 0x4e2   : > { %3222 = dma.done.wait (%p2977_p4), [#allocation6], 2048  }
 0x4e3   : > { %3224 = vsyncadd (%p2977_p4), [#allocation6], 4294965248 }
 0x4e4 PF: > { %s17_s20 = sadd.s32 1, %s3247_s20   ;;  %s3560_s15 = smov %s3231_s16 }
 0x4e5   : > { %p14_p5 = scmp.ge.s32.totalorder %s17_s20, 5   ;;  %s3561_s16 = smov %s3235_s17 }
 0x4e6   : > { %s3562_s17 = smov %s3360_s13  ;;  %s3563_s18 = smov %s3243_s19 }
 0x4e7   : > { %s3564_s19 = smov %s3566_s6  ;;  %16 = sbr.rel (!%p14_p5) target bundleno = 7 (0x7), region = 110 }
 0x4ec   :  { %2061 = vsyncpa [#allocation5], 1 }
 0x4ed   :  { %2063 = vsyncpa [#allocation5 + $0x1], 1 }
 0x4ee   :  { %2064 = vsyncpa [#allocation8], 1 }
 0x4ef   :  { %2065 = vsyncpa [#allocation6], 1 }
 0x4f0   :  { %2067 = vsyncpa [#allocation6 + $0x1], 1 }

</bundles_post_ra>
